<compile_context>
chip_gen: v5e
topology: v5e:2x2
jax: 0.10.0
libtpu: 0.0.40
codegen_flags: <defaults>
</compile_context>

<pallas_src>
import functools

import jax
import jax.numpy as jnp
from jax import lax
from jax.experimental import pallas as pl
from jax.experimental.pallas import tpu as pltpu


# ---------------------------------------------------------------------------
# helpers
# ---------------------------------------------------------------------------
def _round_up(x, m):
    return (x + m - 1) // m * m


def _pad2(x, rows, cols):
    r, c = x.shape
    if r == rows and c == cols:
        return x
    return jnp.pad(x, ((0, rows - r), (0, cols - c)))


def _pick_m_tile(m):
    """Returns (tm, M_padded) with tm | M_padded and tm a multiple of 8."""
    m8 = _round_up(m, 8)
    if m8 <= 256:
        return m8, m8
    return 256, _round_up(m, 256)


def _pick_k_tile(k):
    """Returns (tk, K_padded): K padded to a multiple of 128, tk <= 512."""
    kp = _round_up(k, 128)
    if kp <= 512:
        return kp, kp
    for t in range(512, 0, -128):          # 512, 384, 256, 128
        if kp % t == 0:
            return t, kp
    return 128, kp                          # unreachable


def _im2col(x, kh, kw, stride, pad):
    """x: (N,H,W,C) -> patches (N*Ho*Wo, kh*kw*C), plus (N,Ho,Wo)."""
    N, H, W, C = x.shape
    Ho = (H + 2 * pad - kh) // stride + 1
    Wo = (W + 2 * pad - kw) // stride + 1
    xp = jnp.pad(x, ((0, 0), (pad, pad), (pad, pad), (0, 0)))
    cols = []
    for i in range(kh):
        for j in range(kw):
            cols.append(xp[:, i:i + stride * Ho:stride,
                           j:j + stride * Wo:stride, :])
    patches = jnp.concatenate(cols, axis=-1)          # (N,Ho,Wo,kh*kw*C)
    return patches.reshape(N * Ho * Wo, kh * kw * C), (N, Ho, Wo)


# ---------------------------------------------------------------------------
# Kernel 1: tiled GEMM with fused bias + optional output ReLU (stem convs)
#   out = [relu]( A @ W + b ),  A/W bf16 on the MXU, f32 accumulate/epilogue.
# ---------------------------------------------------------------------------
def _gemm_bias_kernel(a_ref, w_ref, b_ref, o_ref, acc_ref, *, relu_out):
    @pl.when(pl.program_id(2) == 0)
    def _init():
        acc_ref[...] = jnp.zeros_like(acc_ref)

    acc_ref[...] += jnp.dot(a_ref[...], w_ref[...],
                            preferred_element_type=jnp.float32)

    @pl.when(pl.program_id(2) == pl.num_programs(2) - 1)
    def _fini():
        out = acc_ref[...] + b_ref[...]
        if relu_out:
            out = jnp.maximum(out, 0.0)
        o_ref[...] = out.astype(o_ref.dtype)


def _conv_gemm(patches, w_mat, bias, *, relu_out):
    """patches:(M,K) f32, w_mat:(K,N) f32, bias:(1,N) f32 -> (M,N) f32."""
    M, K = patches.shape
    N = w_mat.shape[1]
    tm, Mp = _pick_m_tile(M)
    tk, Kp = _pick_k_tile(K)
    Np = _round_up(N, 128)
    tn = 128

    a = _pad2(patches, Mp, Kp).astype(jnp.bfloat16)
    w = _pad2(w_mat, Kp, Np).astype(jnp.bfloat16)
    b = _pad2(bias, 1, Np).astype(jnp.float32)

    kern = functools.partial(_gemm_bias_kernel, relu_out=relu_out)
    out = pl.pallas_call(
        kern,
        out_shape=jax.ShapeDtypeStruct((Mp, Np), jnp.float32),
        grid=(Mp // tm, Np // tn, Kp // tk),
        in_specs=[
            pl.BlockSpec((tm, tk), lambda i, j, k: (i, k)),
            pl.BlockSpec((tk, tn), lambda i, j, k: (k, j)),
            pl.BlockSpec((1, tn), lambda i, j, k: (0, j)),
        ],
        out_specs=pl.BlockSpec((tm, tn), lambda i, j, k: (i, j)),
        scratch_shapes=[pltpu.VMEM((tm, tn), jnp.float32)],
        compiler_params=pltpu.CompilerParams(
            dimension_semantics=("parallel", "parallel", "arbitrary")),
    )(a, w, b)
    return out[:M, :N]


# ---------------------------------------------------------------------------
# Kernel 2: fused residual layer (no bias in either conv)
#   out = x + conv1x1( relu( conv3x3( relu(x) ) ) )   [optional final ReLU]
# The 3x3 conv is an im2col GEMM; its output h1 stays on-chip (never hits HBM).
# ---------------------------------------------------------------------------
def _res_layer_kernel(a_ref, wa_ref, wb_ref, r_ref, o_ref, *, final_relu):
    a = jnp.maximum(a_ref[...], 0.0)                       # relu(x), bf16
    h = jnp.dot(a, wa_ref[...], preferred_element_type=jnp.float32)
    h = jnp.maximum(h, 0.0).astype(jnp.bfloat16)           # relu, bf16 for MXU
    out = r_ref[...] + jnp.dot(h, wb_ref[...],
                               preferred_element_type=jnp.float32)
    if final_relu:
        out = jnp.maximum(out, 0.0)
    o_ref[...] = out.astype(o_ref.dtype)


def _residual_layer(x_nhwc, w_a, w_b, *, final_relu):
    n, hh, ww, c = x_nhwc.shape
    cres = w_a.shape[-1]
    M = n * hh * ww
    K = 9 * c
    patches, _ = _im2col(x_nhwc, 3, 3, 1, 1)               # (M, 9*c) f32

    tm, Mp = _pick_m_tile(M)
    Kp = _round_up(K, 128)
    Cp = _round_up(cres, 128)
    Np = _round_up(c, 128)

    a = _pad2(patches, Mp, Kp).astype(jnp.bfloat16)
    wa = _pad2(w_a.reshape(K, cres), Kp, Cp).astype(jnp.bfloat16)
    wb = _pad2(w_b.reshape(cres, c), Cp, Np).astype(jnp.bfloat16)
    r = _pad2(x_nhwc.reshape(M, c), Mp, Np).astype(jnp.float32)

    kern = functools.partial(_res_layer_kernel, final_relu=final_relu)
    out = pl.pallas_call(
        kern,
        out_shape=jax.ShapeDtypeStruct((Mp, Np), jnp.float32),
        grid=(Mp // tm,),
        in_specs=[
            pl.BlockSpec((tm, Kp), lambda i: (i, 0)),
            pl.BlockSpec((Kp, Cp), lambda i: (0, 0)),
            pl.BlockSpec((Cp, Np), lambda i: (0, 0)),
            pl.BlockSpec((tm, Np), lambda i: (i, 0)),
        ],
        out_specs=pl.BlockSpec((tm, Np), lambda i: (i, 0)),
        compiler_params=pltpu.CompilerParams(
            dimension_semantics=("parallel",)),
    )(a, wa, wb, r)
    return out[:M, :c].reshape(n, hh, ww, c)


# ---------------------------------------------------------------------------
# Encoder parameters (deterministic synthetic init).  Conv weights stored HWIO.
# ---------------------------------------------------------------------------
def init_encoder_params(key, in_channels, num_hiddens, num_residual_layers,
                        num_residual_hiddens):
    def conv_w(k, kh, kw, cin, cout):
        fan_in = kh * kw * cin
        return (jax.random.normal(k, (kh, kw, cin, cout), jnp.float32)
                / jnp.sqrt(fan_in))

    keys = jax.random.split(key, 6 + 2 * num_residual_layers)
    nh2 = num_hiddens // 2
    params = {
        "w1": conv_w(keys[0], 4, 4, in_channels, nh2),
        "b1": 0.01 * jax.random.normal(keys[1], (1, nh2), jnp.float32),
        "w2": conv_w(keys[2], 4, 4, nh2, num_hiddens),
        "b2": 0.01 * jax.random.normal(keys[3], (1, num_hiddens), jnp.float32),
        "w3": conv_w(keys[4], 3, 3, num_hiddens, num_hiddens),
        "b3": 0.01 * jax.random.normal(keys[5], (1, num_hiddens), jnp.float32),
        "res": [],
    }
    for l in range(num_residual_layers):
        k1, k2 = keys[6 + 2 * l], keys[7 + 2 * l]
        params["res"].append({
            "w_a": conv_w(k1, 3, 3, num_hiddens, num_residual_hiddens),  # no bias
            "w_b": conv_w(k2, 1, 1, num_residual_hiddens, num_hiddens),  # no bias
        })
    return params


# ---------------------------------------------------------------------------
# Encoder forward
# ---------------------------------------------------------------------------
def encoder_forward(x_nchw, params):
    x = jnp.transpose(x_nchw, (0, 2, 3, 1)).astype(jnp.float32)   # NCHW -> NHWC

    def run_conv(x, w_hwio, bias, kh, kw, stride, pad, relu_out):
        cin, cout = w_hwio.shape[2], w_hwio.shape[3]
        patches, (n, ho, wo) = _im2col(x, kh, kw, stride, pad)
        w_mat = w_hwio.reshape(kh * kw * cin, cout)
        out = _conv_gemm(patches, w_mat, bias, relu_out=relu_out)
        return out.reshape(n, ho, wo, cout)

    # _conv_1 (k4,s2,p1) + ReLU
    x = run_conv(x, params["w1"], params["b1"], 4, 4, 2, 1, True)
    # _conv_2 (k4,s2,p1) + ReLU
    x = run_conv(x, params["w2"], params["b2"], 4, 4, 2, 1, True)
    # _conv_3 (k3,s1,p1), no activation
    x = run_conv(x, params["w3"], params["b3"], 3, 3, 1, 1, False)

    num_layers = len(params["res"])
    if num_layers == 0:
        x = jnp.maximum(x, 0.0)            # stack with zero layers -> just ReLU
    else:
        # each layer is one fused Pallas kernel; the stack's final ReLU is
        # folded into the last layer's kernel.
        for li, rp in enumerate(params["res"]):
            x = _residual_layer(x, rp["w_a"], rp["w_b"],
                                final_relu=(li == num_layers - 1))

    return jnp.transpose(x, (0, 3, 1, 2))   # NHWC -> NCHW


# ---------------------------------------------------------------------------
# Pure-JAX reference (lax.conv with matching bf16 MXU inputs) for validation
# ---------------------------------------------------------------------------
def _ref_forward(x_nchw, params):
    x = jnp.transpose(x_nchw, (0, 2, 3, 1)).astype(jnp.float32)
    dn = ("NHWC", "HWIO", "NHWC")

    def conv(x, w, s, p):
        return lax.conv_general_dilated(
            x.astype(jnp.bfloat16), w.astype(jnp.bfloat16), (s, s),
            [(p, p), (p, p)], dimension_numbers=dn,
            preferred_element_type=jnp.float32)

    x = jax.nn.relu(conv(x, params["w1"], 2, 1) + params["b1"])
    x = jax.nn.relu(conv(x, params["w2"], 2, 1) + params["b2"])
    x = conv(x, params["w3"], 1, 1) + params["b3"]
    for rp in params["res"]:
        h = conv(jax.nn.relu(x), rp["w_a"], 1, 1)
        h = conv(jax.nn.relu(h), rp["w_b"], 1, 0)
        x = x + h
    x = jax.nn.relu(x)
    return jnp.transpose(x, (0, 3, 1, 2))


if __name__ == "__main__":
    # Small config: in_channels=4, num_hiddens=32, 2 residual layers,
    # num_residual_hiddens=8, input (2, 4, 16, 16) NCHW.
    in_channels, num_hiddens = 4, 32
    num_residual_layers, num_residual_hiddens = 2, 8

    key = jax.random.PRNGKey(0)
    kx, kp = jax.random.split(key)
    x = jax.random.normal(kx, (2, in_channels, 16, 16), jnp.float32)
    params = init_encoder_params(kp, in_channels, num_hiddens,
                                 num_residual_layers, num_residual_hiddens)

    fwd = jax.jit(encoder_forward)
    out = jax.block_until_ready(fwd(x, params))

    ref = jax.block_until_ready(_ref_forward(x, params))
    assert out.shape == (2, num_hiddens, 4, 4), out.shape
    max_err = float(jnp.max(jnp.abs(out - ref)))
    assert jnp.allclose(out, ref, atol=3e-2, rtol=3e-2), max_err

    print("KERNEL_OK")
</pallas_src>

<mosaic_0001>
module attributes {stable_mosaic.version = 11 : i64} {
  func.func @_gemm_bias_kernel(%arg0: i32, %arg1: i32, %arg2: i32, %arg3: memref<128x128xbf16, #tpu.memory_space<vmem>>, %arg4: memref<128x128xbf16, #tpu.memory_space<vmem>>, %arg5: memref<1x128xf32, #tpu.memory_space<vmem>>, %arg6: memref<128x128xf32, #tpu.memory_space<vmem>>, %arg7: memref<128x128xf32, #tpu.memory_space<vmem>>) attributes {dimension_semantics = [#tpu.dimension_semantics<parallel>, #tpu.dimension_semantics<parallel>, #tpu.dimension_semantics<arbitrary>], iteration_bounds = array<i64: 1, 1, 1>, scalar_prefetch = 0 : i64, scratch_operands = 1 : i64, tpu.core_type = #tpu.core_type<tc>, window_params = [{transform_indices = @transform_0, window_bounds = array<i64: 128, 128>}, {transform_indices = @transform_1, window_bounds = array<i64: 128, 128>}, {transform_indices = @transform_2, window_bounds = array<i64: 1, 128>}, {transform_indices = @transform_3, window_bounds = array<i64: 128, 128>}]} {
    %c0_i32 = arith.constant 0 : i32
    %0 = arith.cmpi eq, %arg2, %c0_i32 : i32
    %1 = arith.extui %0 : i1 to i32
    %c0_i32_0 = arith.constant 0 : i32
    %2 = arith.cmpi ne, %1, %c0_i32_0 : i32
    scf.if %2 {
      %cst_10 = arith.constant 0.000000e+00 : f32
      %12 = vector.broadcast %cst_10 : f32 to vector<128x128xf32>
      %c0_11 = arith.constant 0 : index
      %c0_12 = arith.constant 0 : index
      %13 = vector.load %arg7[%c0_11, %c0_12] : memref<128x128xf32, #tpu.memory_space<vmem>>, vector<128x128xf32>
      tpu.vector_store %arg7[%c0_11, %c0_12], %12 {strides = array<i32>} : memref<128x128xf32, #tpu.memory_space<vmem>>, vector<128x128xf32>,
    } else {
    }
    %c0 = arith.constant 0 : index
    %c0_1 = arith.constant 0 : index
    %3 = vector.load %arg7[%c0, %c0_1] : memref<128x128xf32, #tpu.memory_space<vmem>>, vector<128x128xf32>
    %c0_2 = arith.constant 0 : index
    %c0_3 = arith.constant 0 : index
    %4 = vector.load %arg3[%c0_2, %c0_3] : memref<128x128xbf16, #tpu.memory_space<vmem>>, vector<128x128xbf16>
    %c0_4 = arith.constant 0 : index
    %c0_5 = arith.constant 0 : index
    %5 = vector.load %arg4[%c0_4, %c0_5] : memref<128x128xbf16, #tpu.memory_space<vmem>>, vector<128x128xbf16>
    %cst = arith.constant dense<0.000000e+00> : vector<128x128xf32>
    %6 = tpu.matmul %4, %5, %cst {dimension_numbers = #tpu.dot_dimension_numbers<[1], [0], [0], [1], [0, 0, 1, 1], [], []>} : vector<128x128xbf16>, vector<128x128xbf16>, vector<128x128xf32> -> vector<128x128xf32>
    %7 = arith.addf %3, %6 : vector<128x128xf32>
    %c0_6 = arith.constant 0 : index
    %c0_7 = arith.constant 0 : index
    %8 = vector.load %arg7[%c0_6, %c0_7] : memref<128x128xf32, #tpu.memory_space<vmem>>, vector<128x128xf32>
    tpu.vector_store %arg7[%c0_6, %c0_7], %7 {strides = array<i32>} : memref<128x128xf32, #tpu.memory_space<vmem>>, vector<128x128xf32>,
    %c0_i32_8 = arith.constant 0 : i32
    %9 = arith.cmpi eq, %arg2, %c0_i32_8 : i32
    %10 = arith.extui %9 : i1 to i32
    %c0_i32_9 = arith.constant 0 : i32
    %11 = arith.cmpi ne, %10, %c0_i32_9 : i32
    scf.if %11 {
      %c0_10 = arith.constant 0 : index
      %c0_11 = arith.constant 0 : index
      %12 = vector.load %arg7[%c0_10, %c0_11] : memref<128x128xf32, #tpu.memory_space<vmem>>, vector<128x128xf32>
      %c0_12 = arith.constant 0 : index
      %c0_13 = arith.constant 0 : index
      %13 = vector.load %arg5[%c0_12, %c0_13] : memref<1x128xf32, #tpu.memory_space<vmem>>, vector<1x128xf32>
      %14 = vector.broadcast %13 : vector<1x128xf32> to vector<128x128xf32>
      %15 = arith.addf %12, %14 : vector<128x128xf32>
      %cst_14 = arith.constant 0.000000e+00 : f32
      %16 = vector.broadcast %cst_14 : f32 to vector<128x128xf32>
      %17 = arith.maximumf %15, %16 : vector<128x128xf32>
      %c0_15 = arith.constant 0 : index
      %c0_16 = arith.constant 0 : index
      %18 = vector.load %arg6[%c0_15, %c0_16] : memref<128x128xf32, #tpu.memory_space<vmem>>, vector<128x128xf32>
      tpu.vector_store %arg6[%c0_15, %c0_16], %17 {strides = array<i32>} : memref<128x128xf32, #tpu.memory_space<vmem>>, vector<128x128xf32>,
    } else {
    }
    return
  }
  func.func @transform_0(%arg0: i32, %arg1: i32, %arg2: i32) -> (i32, i32) {
    %c0_i32 = arith.constant 0 : i32
    return %arg0, %arg2 : i32, i32
  }
  func.func @transform_1(%arg0: i32, %arg1: i32, %arg2: i32) -> (i32, i32) {
    %c0_i32 = arith.constant 0 : i32
    return %arg2, %arg1 : i32, i32
  }
  func.func @transform_2(%arg0: i32, %arg1: i32, %arg2: i32) -> (i32, i32) {
    %c0_i32 = arith.constant 0 : i32
    %c0_i32_0 = arith.constant 0 : i32
    return %c0_i32, %arg1 : i32, i32
  }
  func.func @transform_3(%arg0: i32, %arg1: i32, %arg2: i32) -> (i32, i32) {
    %c0_i32 = arith.constant 0 : i32
    return %arg0, %arg1 : i32, i32
  }
}

module attributes {stable_mosaic.version = 11 : i64} {
  func.func @_gemm_bias_kernel(%arg0: i32, %arg1: i32, %arg2: i32, %arg3: memref<32x256xbf16, #tpu.memory_space<vmem>>, %arg4: memref<256x128xbf16, #tpu.memory_space<vmem>>, %arg5: memref<1x128xf32, #tpu.memory_space<vmem>>, %arg6: memref<32x128xf32, #tpu.memory_space<vmem>>, %arg7: memref<32x128xf32, #tpu.memory_space<vmem>>) attributes {dimension_semantics = [#tpu.dimension_semantics<parallel>, #tpu.dimension_semantics<parallel>, #tpu.dimension_semantics<arbitrary>], iteration_bounds = array<i64: 1, 1, 1>, scalar_prefetch = 0 : i64, scratch_operands = 1 : i64, tpu.core_type = #tpu.core_type<tc>, window_params = [{transform_indices = @transform_0, window_bounds = array<i64: 32, 256>}, {transform_indices = @transform_1, window_bounds = array<i64: 256, 128>}, {transform_indices = @transform_2, window_bounds = array<i64: 1, 128>}, {transform_indices = @transform_3, window_bounds = array<i64: 32, 128>}]} {
    %c0_i32 = arith.constant 0 : i32
    %0 = arith.cmpi eq, %arg2, %c0_i32 : i32
    %1 = arith.extui %0 : i1 to i32
    %c0_i32_0 = arith.constant 0 : i32
    %2 = arith.cmpi ne, %1, %c0_i32_0 : i32
    scf.if %2 {
      %cst_10 = arith.constant 0.000000e+00 : f32
      %12 = vector.broadcast %cst_10 : f32 to vector<32x128xf32>
      %c0_11 = arith.constant 0 : index
      %c0_12 = arith.constant 0 : index
      %13 = vector.load %arg7[%c0_11, %c0_12] : memref<32x128xf32, #tpu.memory_space<vmem>>, vector<32x128xf32>
      tpu.vector_store %arg7[%c0_11, %c0_12], %12 {strides = array<i32>} : memref<32x128xf32, #tpu.memory_space<vmem>>, vector<32x128xf32>,
    } else {
    }
    %c0 = arith.constant 0 : index
    %c0_1 = arith.constant 0 : index
    %3 = vector.load %arg7[%c0, %c0_1] : memref<32x128xf32, #tpu.memory_space<vmem>>, vector<32x128xf32>
    %c0_2 = arith.constant 0 : index
    %c0_3 = arith.constant 0 : index
    %4 = vector.load %arg3[%c0_2, %c0_3] : memref<32x256xbf16, #tpu.memory_space<vmem>>, vector<32x256xbf16>
    %c0_4 = arith.constant 0 : index
    %c0_5 = arith.constant 0 : index
    %5 = vector.load %arg4[%c0_4, %c0_5] : memref<256x128xbf16, #tpu.memory_space<vmem>>, vector<256x128xbf16>
    %cst = arith.constant dense<0.000000e+00> : vector<32x128xf32>
    %6 = tpu.matmul %4, %5, %cst {dimension_numbers = #tpu.dot_dimension_numbers<[1], [0], [0], [1], [0, 0, 1, 1], [], []>} : vector<32x256xbf16>, vector<256x128xbf16>, vector<32x128xf32> -> vector<32x128xf32>
    %7 = arith.addf %3, %6 : vector<32x128xf32>
    %c0_6 = arith.constant 0 : index
    %c0_7 = arith.constant 0 : index
    %8 = vector.load %arg7[%c0_6, %c0_7] : memref<32x128xf32, #tpu.memory_space<vmem>>, vector<32x128xf32>
    tpu.vector_store %arg7[%c0_6, %c0_7], %7 {strides = array<i32>} : memref<32x128xf32, #tpu.memory_space<vmem>>, vector<32x128xf32>,
    %c0_i32_8 = arith.constant 0 : i32
    %9 = arith.cmpi eq, %arg2, %c0_i32_8 : i32
    %10 = arith.extui %9 : i1 to i32
    %c0_i32_9 = arith.constant 0 : i32
    %11 = arith.cmpi ne, %10, %c0_i32_9 : i32
    scf.if %11 {
      %c0_10 = arith.constant 0 : index
      %c0_11 = arith.constant 0 : index
      %12 = vector.load %arg7[%c0_10, %c0_11] : memref<32x128xf32, #tpu.memory_space<vmem>>, vector<32x128xf32>
      %c0_12 = arith.constant 0 : index
      %c0_13 = arith.constant 0 : index
      %13 = vector.load %arg5[%c0_12, %c0_13] : memref<1x128xf32, #tpu.memory_space<vmem>>, vector<1x128xf32>
      %14 = vector.broadcast %13 : vector<1x128xf32> to vector<32x128xf32>
      %15 = arith.addf %12, %14 : vector<32x128xf32>
      %cst_14 = arith.constant 0.000000e+00 : f32
      %16 = vector.broadcast %cst_14 : f32 to vector<32x128xf32>
      %17 = arith.maximumf %15, %16 : vector<32x128xf32>
      %c0_15 = arith.constant 0 : index
      %c0_16 = arith.constant 0 : index
      %18 = vector.load %arg6[%c0_15, %c0_16] : memref<32x128xf32, #tpu.memory_space<vmem>>, vector<32x128xf32>
      tpu.vector_store %arg6[%c0_15, %c0_16], %17 {strides = array<i32>} : memref<32x128xf32, #tpu.memory_space<vmem>>, vector<32x128xf32>,
    } else {
    }
    return
  }
  func.func @transform_0(%arg0: i32, %arg1: i32, %arg2: i32) -> (i32, i32) {
    %c0_i32 = arith.constant 0 : i32
    return %arg0, %arg2 : i32, i32
  }
  func.func @transform_1(%arg0: i32, %arg1: i32, %arg2: i32) -> (i32, i32) {
    %c0_i32 = arith.constant 0 : i32
    return %arg2, %arg1 : i32, i32
  }
  func.func @transform_2(%arg0: i32, %arg1: i32, %arg2: i32) -> (i32, i32) {
    %c0_i32 = arith.constant 0 : i32
    %c0_i32_0 = arith.constant 0 : i32
    return %c0_i32, %arg1 : i32, i32
  }
  func.func @transform_3(%arg0: i32, %arg1: i32, %arg2: i32) -> (i32, i32) {
    %c0_i32 = arith.constant 0 : i32
    return %arg0, %arg1 : i32, i32
  }
}

module attributes {stable_mosaic.version = 11 : i64} {
  func.func @_gemm_bias_kernel(%arg0: i32, %arg1: i32, %arg2: i32, %arg3: memref<32x384xbf16, #tpu.memory_space<vmem>>, %arg4: memref<384x128xbf16, #tpu.memory_space<vmem>>, %arg5: memref<1x128xf32, #tpu.memory_space<vmem>>, %arg6: memref<32x128xf32, #tpu.memory_space<vmem>>, %arg7: memref<32x128xf32, #tpu.memory_space<vmem>>) attributes {dimension_semantics = [#tpu.dimension_semantics<parallel>, #tpu.dimension_semantics<parallel>, #tpu.dimension_semantics<arbitrary>], iteration_bounds = array<i64: 1, 1, 1>, scalar_prefetch = 0 : i64, scratch_operands = 1 : i64, tpu.core_type = #tpu.core_type<tc>, window_params = [{transform_indices = @transform_0, window_bounds = array<i64: 32, 384>}, {transform_indices = @transform_1, window_bounds = array<i64: 384, 128>}, {transform_indices = @transform_2, window_bounds = array<i64: 1, 128>}, {transform_indices = @transform_3, window_bounds = array<i64: 32, 128>}]} {
    %c0_i32 = arith.constant 0 : i32
    %0 = arith.cmpi eq, %arg2, %c0_i32 : i32
    %1 = arith.extui %0 : i1 to i32
    %c0_i32_0 = arith.constant 0 : i32
    %2 = arith.cmpi ne, %1, %c0_i32_0 : i32
    scf.if %2 {
      %cst_10 = arith.constant 0.000000e+00 : f32
      %12 = vector.broadcast %cst_10 : f32 to vector<32x128xf32>
      %c0_11 = arith.constant 0 : index
      %c0_12 = arith.constant 0 : index
      %13 = vector.load %arg7[%c0_11, %c0_12] : memref<32x128xf32, #tpu.memory_space<vmem>>, vector<32x128xf32>
      tpu.vector_store %arg7[%c0_11, %c0_12], %12 {strides = array<i32>} : memref<32x128xf32, #tpu.memory_space<vmem>>, vector<32x128xf32>,
    } else {
    }
    %c0 = arith.constant 0 : index
    %c0_1 = arith.constant 0 : index
    %3 = vector.load %arg7[%c0, %c0_1] : memref<32x128xf32, #tpu.memory_space<vmem>>, vector<32x128xf32>
    %c0_2 = arith.constant 0 : index
    %c0_3 = arith.constant 0 : index
    %4 = vector.load %arg3[%c0_2, %c0_3] : memref<32x384xbf16, #tpu.memory_space<vmem>>, vector<32x384xbf16>
    %c0_4 = arith.constant 0 : index
    %c0_5 = arith.constant 0 : index
    %5 = vector.load %arg4[%c0_4, %c0_5] : memref<384x128xbf16, #tpu.memory_space<vmem>>, vector<384x128xbf16>
    %cst = arith.constant dense<0.000000e+00> : vector<32x128xf32>
    %6 = tpu.matmul %4, %5, %cst {dimension_numbers = #tpu.dot_dimension_numbers<[1], [0], [0], [1], [0, 0, 1, 1], [], []>} : vector<32x384xbf16>, vector<384x128xbf16>, vector<32x128xf32> -> vector<32x128xf32>
    %7 = arith.addf %3, %6 : vector<32x128xf32>
    %c0_6 = arith.constant 0 : index
    %c0_7 = arith.constant 0 : index
    %8 = vector.load %arg7[%c0_6, %c0_7] : memref<32x128xf32, #tpu.memory_space<vmem>>, vector<32x128xf32>
    tpu.vector_store %arg7[%c0_6, %c0_7], %7 {strides = array<i32>} : memref<32x128xf32, #tpu.memory_space<vmem>>, vector<32x128xf32>,
    %c0_i32_8 = arith.constant 0 : i32
    %9 = arith.cmpi eq, %arg2, %c0_i32_8 : i32
    %10 = arith.extui %9 : i1 to i32
    %c0_i32_9 = arith.constant 0 : i32
    %11 = arith.cmpi ne, %10, %c0_i32_9 : i32
    scf.if %11 {
      %c0_10 = arith.constant 0 : index
      %c0_11 = arith.constant 0 : index
      %12 = vector.load %arg7[%c0_10, %c0_11] : memref<32x128xf32, #tpu.memory_space<vmem>>, vector<32x128xf32>
      %c0_12 = arith.constant 0 : index
      %c0_13 = arith.constant 0 : index
      %13 = vector.load %arg5[%c0_12, %c0_13] : memref<1x128xf32, #tpu.memory_space<vmem>>, vector<1x128xf32>
      %14 = vector.broadcast %13 : vector<1x128xf32> to vector<32x128xf32>
      %15 = arith.addf %12, %14 : vector<32x128xf32>
      %c0_14 = arith.constant 0 : index
      %c0_15 = arith.constant 0 : index
      %16 = vector.load %arg6[%c0_14, %c0_15] : memref<32x128xf32, #tpu.memory_space<vmem>>, vector<32x128xf32>
      tpu.vector_store %arg6[%c0_14, %c0_15], %15 {strides = array<i32>} : memref<32x128xf32, #tpu.memory_space<vmem>>, vector<32x128xf32>,
    } else {
    }
    return
  }
  func.func @transform_0(%arg0: i32, %arg1: i32, %arg2: i32) -> (i32, i32) {
    %c0_i32 = arith.constant 0 : i32
    return %arg0, %arg2 : i32, i32
  }
  func.func @transform_1(%arg0: i32, %arg1: i32, %arg2: i32) -> (i32, i32) {
    %c0_i32 = arith.constant 0 : i32
    return %arg2, %arg1 : i32, i32
  }
  func.func @transform_2(%arg0: i32, %arg1: i32, %arg2: i32) -> (i32, i32) {
    %c0_i32 = arith.constant 0 : i32
    %c0_i32_0 = arith.constant 0 : i32
    return %c0_i32, %arg1 : i32, i32
  }
  func.func @transform_3(%arg0: i32, %arg1: i32, %arg2: i32) -> (i32, i32) {
    %c0_i32 = arith.constant 0 : i32
    return %arg0, %arg1 : i32, i32
  }
}

module attributes {stable_mosaic.version = 11 : i64} {
  func.func @_res_layer_kernel(%arg0: i32, %arg1: memref<32x384xbf16, #tpu.memory_space<vmem>>, %arg2: memref<384x128xbf16, #tpu.memory_space<vmem>>, %arg3: memref<128x128xbf16, #tpu.memory_space<vmem>>, %arg4: memref<32x128xf32, #tpu.memory_space<vmem>>, %arg5: memref<32x128xf32, #tpu.memory_space<vmem>>) attributes {dimension_semantics = [#tpu.dimension_semantics<parallel>], iteration_bounds = array<i64: 1>, scalar_prefetch = 0 : i64, scratch_operands = 0 : i64, tpu.core_type = #tpu.core_type<tc>, window_params = [{transform_indices = @transform_0, window_bounds = array<i64: 32, 384>}, {pipeline_mode = #tpu.pipeline_mode<synchronous>, transform_indices = @transform_1, window_bounds = array<i64: 384, 128>}, {pipeline_mode = #tpu.pipeline_mode<synchronous>, transform_indices = @transform_2, window_bounds = array<i64: 128, 128>}, {transform_indices = @transform_3, window_bounds = array<i64: 32, 128>}, {transform_indices = @transform_4, window_bounds = array<i64: 32, 128>}]} {
    %c0 = arith.constant 0 : index
    %c0_0 = arith.constant 0 : index
    %0 = vector.load %arg1[%c0, %c0_0] : memref<32x384xbf16, #tpu.memory_space<vmem>>, vector<32x384xbf16>
    %cst = arith.constant 0.000000e+00 : bf16
    %1 = vector.broadcast %cst : bf16 to vector<32x384xbf16>
    %2 = arith.maximumf %0, %1 : vector<32x384xbf16>
    %c0_1 = arith.constant 0 : index
    %c0_2 = arith.constant 0 : index
    %3 = vector.load %arg2[%c0_1, %c0_2] : memref<384x128xbf16, #tpu.memory_space<vmem>>, vector<384x128xbf16>
    %cst_3 = arith.constant dense<0.000000e+00> : vector<32x128xf32>
    %4 = tpu.matmul %2, %3, %cst_3 {dimension_numbers = #tpu.dot_dimension_numbers<[1], [0], [0], [1], [0, 0, 1, 1], [], []>} : vector<32x384xbf16>, vector<384x128xbf16>, vector<32x128xf32> -> vector<32x128xf32>
    %cst_4 = arith.constant 0.000000e+00 : f32
    %5 = vector.broadcast %cst_4 : f32 to vector<32x128xf32>
    %6 = arith.maximumf %4, %5 : vector<32x128xf32>
    %7 = arith.truncf %6 : vector<32x128xf32> to vector<32x128xbf16>
    %c0_5 = arith.constant 0 : index
    %c0_6 = arith.constant 0 : index
    %8 = vector.load %arg4[%c0_5, %c0_6] : memref<32x128xf32, #tpu.memory_space<vmem>>, vector<32x128xf32>
    %c0_7 = arith.constant 0 : index
    %c0_8 = arith.constant 0 : index
    %9 = vector.load %arg3[%c0_7, %c0_8] : memref<128x128xbf16, #tpu.memory_space<vmem>>, vector<128x128xbf16>
    %cst_9 = arith.constant dense<0.000000e+00> : vector<32x128xf32>
    %10 = tpu.matmul %7, %9, %cst_9 {dimension_numbers = #tpu.dot_dimension_numbers<[1], [0], [0], [1], [0, 0, 1, 1], [], []>} : vector<32x128xbf16>, vector<128x128xbf16>, vector<32x128xf32> -> vector<32x128xf32>
    %11 = arith.addf %8, %10 : vector<32x128xf32>
    %c0_10 = arith.constant 0 : index
    %c0_11 = arith.constant 0 : index
    %12 = vector.load %arg5[%c0_10, %c0_11] : memref<32x128xf32, #tpu.memory_space<vmem>>, vector<32x128xf32>
    tpu.vector_store %arg5[%c0_10, %c0_11], %11 {strides = array<i32>} : memref<32x128xf32, #tpu.memory_space<vmem>>, vector<32x128xf32>,
    return
  }
  func.func @transform_0(%arg0: i32) -> (i32, i32) {
    %c0_i32 = arith.constant 0 : i32
    %c0_i32_0 = arith.constant 0 : i32
    return %arg0, %c0_i32 : i32, i32
  }
  func.func @transform_1(%arg0: i32) -> (i32, i32) {
    %c0_i32 = arith.constant 0 : i32
    %c0_i32_0 = arith.constant 0 : i32
    %c0_i32_1 = arith.constant 0 : i32
    return %c0_i32, %c0_i32_0 : i32, i32
  }
  func.func @transform_2(%arg0: i32) -> (i32, i32) {
    %c0_i32 = arith.constant 0 : i32
    %c0_i32_0 = arith.constant 0 : i32
    %c0_i32_1 = arith.constant 0 : i32
    return %c0_i32, %c0_i32_0 : i32, i32
  }
  func.func @transform_3(%arg0: i32) -> (i32, i32) {
    %c0_i32 = arith.constant 0 : i32
    %c0_i32_0 = arith.constant 0 : i32
    return %arg0, %c0_i32 : i32, i32
  }
  func.func @transform_4(%arg0: i32) -> (i32, i32) {
    %c0_i32 = arith.constant 0 : i32
    %c0_i32_0 = arith.constant 0 : i32
    return %arg0, %c0_i32 : i32, i32
  }
}

module attributes {stable_mosaic.version = 11 : i64} {
  func.func @_res_layer_kernel(%arg0: i32, %arg1: memref<32x384xbf16, #tpu.memory_space<vmem>>, %arg2: memref<384x128xbf16, #tpu.memory_space<vmem>>, %arg3: memref<128x128xbf16, #tpu.memory_space<vmem>>, %arg4: memref<32x128xf32, #tpu.memory_space<vmem>>, %arg5: memref<32x128xf32, #tpu.memory_space<vmem>>) attributes {dimension_semantics = [#tpu.dimension_semantics<parallel>], iteration_bounds = array<i64: 1>, scalar_prefetch = 0 : i64, scratch_operands = 0 : i64, tpu.core_type = #tpu.core_type<tc>, window_params = [{transform_indices = @transform_0, window_bounds = array<i64: 32, 384>}, {pipeline_mode = #tpu.pipeline_mode<synchronous>, transform_indices = @transform_1, window_bounds = array<i64: 384, 128>}, {pipeline_mode = #tpu.pipeline_mode<synchronous>, transform_indices = @transform_2, window_bounds = array<i64: 128, 128>}, {transform_indices = @transform_3, window_bounds = array<i64: 32, 128>}, {transform_indices = @transform_4, window_bounds = array<i64: 32, 128>}]} {
    %c0 = arith.constant 0 : index
    %c0_0 = arith.constant 0 : index
    %0 = vector.load %arg1[%c0, %c0_0] : memref<32x384xbf16, #tpu.memory_space<vmem>>, vector<32x384xbf16>
    %cst = arith.constant 0.000000e+00 : bf16
    %1 = vector.broadcast %cst : bf16 to vector<32x384xbf16>
    %2 = arith.maximumf %0, %1 : vector<32x384xbf16>
    %c0_1 = arith.constant 0 : index
    %c0_2 = arith.constant 0 : index
    %3 = vector.load %arg2[%c0_1, %c0_2] : memref<384x128xbf16, #tpu.memory_space<vmem>>, vector<384x128xbf16>
    %cst_3 = arith.constant dense<0.000000e+00> : vector<32x128xf32>
    %4 = tpu.matmul %2, %3, %cst_3 {dimension_numbers = #tpu.dot_dimension_numbers<[1], [0], [0], [1], [0, 0, 1, 1], [], []>} : vector<32x384xbf16>, vector<384x128xbf16>, vector<32x128xf32> -> vector<32x128xf32>
    %cst_4 = arith.constant 0.000000e+00 : f32
    %5 = vector.broadcast %cst_4 : f32 to vector<32x128xf32>
    %6 = arith.maximumf %4, %5 : vector<32x128xf32>
    %7 = arith.truncf %6 : vector<32x128xf32> to vector<32x128xbf16>
    %c0_5 = arith.constant 0 : index
    %c0_6 = arith.constant 0 : index
    %8 = vector.load %arg4[%c0_5, %c0_6] : memref<32x128xf32, #tpu.memory_space<vmem>>, vector<32x128xf32>
    %c0_7 = arith.constant 0 : index
    %c0_8 = arith.constant 0 : index
    %9 = vector.load %arg3[%c0_7, %c0_8] : memref<128x128xbf16, #tpu.memory_space<vmem>>, vector<128x128xbf16>
    %cst_9 = arith.constant dense<0.000000e+00> : vector<32x128xf32>
    %10 = tpu.matmul %7, %9, %cst_9 {dimension_numbers = #tpu.dot_dimension_numbers<[1], [0], [0], [1], [0, 0, 1, 1], [], []>} : vector<32x128xbf16>, vector<128x128xbf16>, vector<32x128xf32> -> vector<32x128xf32>
    %11 = arith.addf %8, %10 : vector<32x128xf32>
    %cst_10 = arith.constant 0.000000e+00 : f32
    %12 = vector.broadcast %cst_10 : f32 to vector<32x128xf32>
    %13 = arith.maximumf %11, %12 : vector<32x128xf32>
    %c0_11 = arith.constant 0 : index
    %c0_12 = arith.constant 0 : index
    %14 = vector.load %arg5[%c0_11, %c0_12] : memref<32x128xf32, #tpu.memory_space<vmem>>, vector<32x128xf32>
    tpu.vector_store %arg5[%c0_11, %c0_12], %13 {strides = array<i32>} : memref<32x128xf32, #tpu.memory_space<vmem>>, vector<32x128xf32>,
    return
  }
  func.func @transform_0(%arg0: i32) -> (i32, i32) {
    %c0_i32 = arith.constant 0 : i32
    %c0_i32_0 = arith.constant 0 : i32
    return %arg0, %c0_i32 : i32, i32
  }
  func.func @transform_1(%arg0: i32) -> (i32, i32) {
    %c0_i32 = arith.constant 0 : i32
    %c0_i32_0 = arith.constant 0 : i32
    %c0_i32_1 = arith.constant 0 : i32
    return %c0_i32, %c0_i32_0 : i32, i32
  }
  func.func @transform_2(%arg0: i32) -> (i32, i32) {
    %c0_i32 = arith.constant 0 : i32
    %c0_i32_0 = arith.constant 0 : i32
    %c0_i32_1 = arith.constant 0 : i32
    return %c0_i32, %c0_i32_0 : i32, i32
  }
  func.func @transform_3(%arg0: i32) -> (i32, i32) {
    %c0_i32 = arith.constant 0 : i32
    %c0_i32_0 = arith.constant 0 : i32
    return %arg0, %c0_i32 : i32, i32
  }
  func.func @transform_4(%arg0: i32) -> (i32, i32) {
    %c0_i32 = arith.constant 0 : i32
    %c0_i32_0 = arith.constant 0 : i32
    return %arg0, %c0_i32 : i32, i32
  }
}

</mosaic_0001>

<bundles_post_ra>
// kernel: encoder_forward.5
= control target key start
LH: loop header
LB: loop body
LE: loop exit
PB: predicated region body
PF: predicated region fallthrough
CT: control target
= control target key end

     0   :  { %s558_s1 = inlined_call_operand.vmem [shape: bf16[128,128], index: 1, kind: input, shape index: {}]   ;;  %s559_s2 = inlined_call_operand.vmem [shape: f32[1,128], index: 2, kind: input, shape index: {}]   ;;  %s560_s0 = inlined_call_operand.vmem [shape: bf16[128,128], index: 0, kind: input, shape index: {}]   ;;  %s561_s3 = inlined_call_operand.vmem [shape: f32[128,128], index: 3, kind: output, shape index: {}]  }
   0x1   :  { %v413_v0 = vld [vmem:[%s558_s1 + $0x38] sm:$0xff]  ;;  %v412_v1 = vld [vmem:[%s558_s1 + $0x30] sm:$0xff]  ;;  %v411_v2 = vld [vmem:[%s558_s1 + $0x28] sm:$0xff] }
   0x2   :  { %178 = vmatpush.bf16.msra.mxu0 %v413_v0  ;;  %414 = vmatpush.bf16.msra.mxu1 %v413_v0  ;;  %v410_v3 = vld [vmem:[%s558_s1 + $0x20] sm:$0xff]  ;;  %v409_v4 = vld [vmem:[%s558_s1 + $0x18] sm:$0xff]  ;;  %v408_v5 = vld [vmem:[%s558_s1 + $0x10] sm:$0xff] }
   0x3   :  { %415 = vmatpush.bf16.msra.mxu2 %v413_v0  ;;  %416 = vmatpush.bf16.msra.mxu3 %v413_v0  ;;  %v407_v6 = vld [vmem:[%s558_s1 + $0x8] sm:$0xff]  ;;  %v406_v7 = vld [vmem:[%s558_s1] sm:$0xff]  ;;  %v400_v9 = vld [vmem:[%s560_s0 + $0x10] sm:$0xff] }
   0x4   :  { %v398_v8 = vld [vmem:[%s560_s0] sm:$0xff]  ;;  %v404_v11 = vld [vmem:[%s560_s0 + $0x30] sm:$0xff]  ;;  %v399_v12 = vld [vmem:[%s560_s0 + $0x8] sm:$0xff] }
   0x5   :  { %v402_v10 = vld [vmem:[%s560_s0 + $0x20] sm:$0xff]  ;;  %v401_v13 = vld [vmem:[%s560_s0 + $0x18] sm:$0xff]  ;;  %v403_v14 = vld [vmem:[%s560_s0 + $0x28] sm:$0xff] }
   0x6   :  { %179 = vmatpush.bf16.msra.mxu0 %v412_v1  ;;  %417 = vmatpush.bf16.msra.mxu1 %v412_v1  ;;  %v405_v15 = vld [vmem:[%s560_s0 + $0x38] sm:$0xff]  ;;  %v438_v16 = vld [vmem:[%s559_s2] ss:$0 sm:$0xff] }
   0x7   :  { %418 = vmatpush.bf16.msra.mxu2 %v412_v1  ;;  %419 = vmatpush.bf16.msra.mxu3 %v412_v1 }
   0xa   :  { %180 = vmatpush.bf16.msra.mxu0 %v411_v2  ;;  %420 = vmatpush.bf16.msra.mxu1 %v411_v2 }
   0xb   :  { %421 = vmatpush.bf16.msra.mxu2 %v411_v2  ;;  %422 = vmatpush.bf16.msra.mxu3 %v411_v2 }
   0xe   :  { %181 = vmatpush.bf16.msra.mxu0 %v410_v3  ;;  %423 = vmatpush.bf16.msra.mxu1 %v410_v3 }
   0xf   :  { %424 = vmatpush.bf16.msra.mxu2 %v410_v3  ;;  %425 = vmatpush.bf16.msra.mxu3 %v410_v3 }
  0x12   :  { %182 = vmatpush.bf16.msra.mxu0 %v409_v4  ;;  %426 = vmatpush.bf16.msra.mxu1 %v409_v4 }
  0x13   :  { %427 = vmatpush.bf16.msra.mxu2 %v409_v4  ;;  %428 = vmatpush.bf16.msra.mxu3 %v409_v4 }
  0x16   :  { %183 = vmatpush.bf16.msra.mxu0 %v408_v5  ;;  %429 = vmatpush.bf16.msra.mxu1 %v408_v5 }
  0x17   :  { %430 = vmatpush.bf16.msra.mxu2 %v408_v5  ;;  %431 = vmatpush.bf16.msra.mxu3 %v408_v5 }
  0x1a   :  { %184 = vmatpush.bf16.msra.mxu0 %v407_v6  ;;  %432 = vmatpush.bf16.msra.mxu1 %v407_v6 }
  0x1b   :  { %433 = vmatpush.bf16.msra.mxu2 %v407_v6  ;;  %434 = vmatpush.bf16.msra.mxu3 %v407_v6 }
  0x1e   :  { %185 = vmatpush.bf16.msra.mxu0 %v406_v7  ;;  %435 = vmatpush.bf16.msra.mxu1 %v406_v7 }
  0x1f   :  { %436 = vmatpush.bf16.msra.mxu2 %v406_v7  ;;  %437 = vmatpush.bf16.msra.mxu3 %v406_v7 }
  0x21   :  { %186 = vmatmul.bf16.vlgmr.msra.gmra.mxu0 %v398_v8  ;;  %196 = vmatmul.bf16.vlgmr.msra.gmra.mxu1 %v400_v9 }
  0x22   :  { %206 = vmatmul.bf16.vlgmr.msra.gmra.mxu2 %v402_v10  ;;  %216 = vmatmul.bf16.vlgmr.msra.gmra.mxu3 %v404_v11 }
  0x31   :  { %191 = vmatmul.bf16.gmra.mxu0 %v399_v12  ;;  %201 = vmatmul.bf16.gmra.mxu1 %v401_v13 }
  0x32   :  { %211 = vmatmul.bf16.gmra.mxu2 %v403_v14  ;;  %221 = vmatmul.bf16.gmra.mxu3 %v405_v15 }
  0x9e   :  { %v187_v17 = vpop.f32.mrf.mxu0  ;;  %v197_v18 = vpop.f32.mrf.mxu1 }
  0x9f   :  { %v282_v19 = vadd.f32 %v438_v16, %v187_v17  ;;  %v286_v20 = vadd.f32 %v438_v16, %v197_v18 }
  0xa1   :  { %v298_v21 = vmax.f32 %v282_v19, 0.0  ;;  %v302_v22 = vmax.f32 %v286_v20, 0.0 }
  0xa3   :  { %314 = vst [vmem:[%s561_s3] sm:$0xff] %v298_v21 }
  0xa4   :  { %318 = vst [vmem:[%s561_s3 + $0x20] sm:$0xff] %v302_v22 }
  0xa5   :  { %v207_v23 = vpop.f32.mrf.mxu2  ;;  %v217_v24 = vpop.f32.mrf.mxu3 }
  0xa6   :  { %v290_v25 = vadd.f32 %v438_v16, %v207_v23  ;;  %v294_v26 = vadd.f32 %v438_v16, %v217_v24  ;;  %v189_v27 = vpop.f32.mrf.mxu0  ;;  %v199_v28 = vpop.f32.mrf.mxu1 }
  0xa7   :  { %v283_v29 = vadd.f32 %v438_v16, %v189_v27  ;;  %v287_v30 = vadd.f32 %v438_v16, %v199_v28 }
  0xa8   :  { %v306_v31 = vmax.f32 %v290_v25, 0.0  ;;  %v310_v32 = vmax.f32 %v294_v26, 0.0 }
  0xa9   :  { %v299_v33 = vmax.f32 %v283_v29, 0.0  ;;  %v303_v34 = vmax.f32 %v287_v30, 0.0 }
  0xaa   :  { %322 = vst [vmem:[%s561_s3 + $0x40] sm:$0xff] %v306_v31 }
  0xab   :  { %326 = vst [vmem:[%s561_s3 + $0x60] sm:$0xff] %v310_v32 }
  0xac   :  { %315 = vst [vmem:[%s561_s3 + $0x8] sm:$0xff] %v299_v33 }
  0xad   :  { %319 = vst [vmem:[%s561_s3 + $0x28] sm:$0xff] %v303_v34  ;;  %v209_v35 = vpop.f32.mrf.mxu2  ;;  %v219_v36 = vpop.f32.mrf.mxu3 }
  0xae   :  { %v291_v37 = vadd.f32 %v438_v16, %v209_v35  ;;  %v295_v38 = vadd.f32 %v438_v16, %v219_v36  ;;  %v192_v39 = vpop.f32.mrf.mxu0  ;;  %v202_v40 = vpop.f32.mrf.mxu1 }
  0xaf   :  { %v284_v41 = vadd.f32 %v438_v16, %v192_v39  ;;  %v288_v42 = vadd.f32 %v438_v16, %v202_v40 }
  0xb0   :  { %v307_v43 = vmax.f32 %v291_v37, 0.0  ;;  %v311_v44 = vmax.f32 %v295_v38, 0.0 }
  0xb1   :  { %v300_v45 = vmax.f32 %v284_v41, 0.0  ;;  %v304_v46 = vmax.f32 %v288_v42, 0.0 }
  0xb2   :  { %323 = vst [vmem:[%s561_s3 + $0x48] sm:$0xff] %v307_v43 }
  0xb3   :  { %327 = vst [vmem:[%s561_s3 + $0x68] sm:$0xff] %v311_v44 }
  0xb4   :  { %316 = vst [vmem:[%s561_s3 + $0x10] sm:$0xff] %v300_v45 }
  0xb5   :  { %320 = vst [vmem:[%s561_s3 + $0x30] sm:$0xff] %v304_v46  ;;  %v212_v47 = vpop.f32.mrf.mxu2  ;;  %v222_v48 = vpop.f32.mrf.mxu3 }
  0xb6   :  { %v292_v49 = vadd.f32 %v438_v16, %v212_v47  ;;  %v296_v50 = vadd.f32 %v438_v16, %v222_v48  ;;  %v194_v51 = vpop.f32.mrf.mxu0  ;;  %v204_v52 = vpop.f32.mrf.mxu1 }
  0xb7   :  { %v285_v53 = vadd.f32 %v438_v16, %v194_v51  ;;  %v289_v54 = vadd.f32 %v438_v16, %v204_v52 }
  0xb8   :  { %v308_v55 = vmax.f32 %v292_v49, 0.0  ;;  %v312_v56 = vmax.f32 %v296_v50, 0.0 }
  0xb9   :  { %v301_v57 = vmax.f32 %v285_v53, 0.0  ;;  %v305_v58 = vmax.f32 %v289_v54, 0.0 }
  0xba   :  { %324 = vst [vmem:[%s561_s3 + $0x50] sm:$0xff] %v308_v55 }
  0xbb   :  { %328 = vst [vmem:[%s561_s3 + $0x70] sm:$0xff] %v312_v56 }
  0xbc   :  { %317 = vst [vmem:[%s561_s3 + $0x18] sm:$0xff] %v301_v57 }
  0xbd   :  { %321 = vst [vmem:[%s561_s3 + $0x38] sm:$0xff] %v305_v58  ;;  %v214_v59 = vpop.f32.mrf.mxu2  ;;  %v224_v60 = vpop.f32.mrf.mxu3 }
  0xbe   :  { %v293_v61 = vadd.f32 %v438_v16, %v214_v59  ;;  %v297_v62 = vadd.f32 %v438_v16, %v224_v60 }
  0xc0   :  { %v309_v63 = vmax.f32 %v293_v61, 0.0  ;;  %v313_v0 = vmax.f32 %v297_v62, 0.0 }
  0xc2   :  { %325 = vst [vmem:[%s561_s3 + $0x58] sm:$0xff] %v309_v63 }
  0xc3   :  { %329 = vst [vmem:[%s561_s3 + $0x78] sm:$0xff] %v313_v0 }

// kernel: encoder_forward.6
= control target key start
LH: loop header
LB: loop body
LE: loop exit
PB: predicated region body
PF: predicated region fallthrough
CT: control target
= control target key end

     0   :  { %s475_s1 = inlined_call_operand.vmem [shape: bf16[256,128], index: 1, kind: input, shape index: {}]   ;;  %s476_s0 = inlined_call_operand.vmem [shape: bf16[32,256], index: 0, kind: input, shape index: {}]   ;;  %s477_s2 = inlined_call_operand.vmem [shape: f32[1,128], index: 2, kind: input, shape index: {}]   ;;  %s478_s3 = inlined_call_operand.vmem [shape: f32[32,128], index: 3, kind: output, shape index: {}]  }
   0x1   :  { %v342_v0 = vld [vmem:[%s475_s1 + $0x38] sm:$0xff]  ;;  %v341_v2 = vld [vmem:[%s475_s1 + $0x30] sm:$0xff]  ;;  %v340_v4 = vld [vmem:[%s475_s1 + $0x28] sm:$0xff] }
   0x2   :  { %v350_v1 = vld [vmem:[%s475_s1 + $0x78] sm:$0xff]  ;;  %178 = vmatpush.bf16.msra.mxu0 %v342_v0  ;;  %351 = vmatpush.bf16.msra.mxu2 %v342_v0  ;;  %v349_v3 = vld [vmem:[%s475_s1 + $0x70] sm:$0xff]  ;;  %v348_v5 = vld [vmem:[%s475_s1 + $0x68] sm:$0xff] }
   0x3   :  { %197 = vmatpush.bf16.msra.mxu1 %v350_v1  ;;  %359 = vmatpush.bf16.msra.mxu3 %v350_v1  ;;  %v339_v6 = vld [vmem:[%s475_s1 + $0x20] sm:$0xff]  ;;  %v338_v8 = vld [vmem:[%s475_s1 + $0x18] sm:$0xff]  ;;  %v337_v10 = vld [vmem:[%s475_s1 + $0x10] sm:$0xff] }
   0x4   :  { %v347_v7 = vld [vmem:[%s475_s1 + $0x60] sm:$0xff]  ;;  %v346_v9 = vld [vmem:[%s475_s1 + $0x58] sm:$0xff]  ;;  %v345_v11 = vld [vmem:[%s475_s1 + $0x50] sm:$0xff] }
   0x5   :  { %v336_v12 = vld [vmem:[%s475_s1 + $0x8] sm:$0xff]  ;;  %v335_v14 = vld [vmem:[%s475_s1] sm:$0xff]  ;;  %v261_v18 = vld [vmem:[%s476_s0 + $0x10] sm:$0xf] }
   0x6   :  { %179 = vmatpush.bf16.msra.mxu0 %v341_v2  ;;  %352 = vmatpush.bf16.msra.mxu2 %v341_v2  ;;  %v344_v13 = vld [vmem:[%s475_s1 + $0x48] sm:$0xff]  ;;  %v343_v15 = vld [vmem:[%s475_s1 + $0x40] sm:$0xff]  ;;  %v334_v19 = vld [vmem:[%s476_s0 + $0x14] sm:$0xf0] }
   0x7   :  { %198 = vmatpush.bf16.msra.mxu1 %v349_v3  ;;  %360 = vmatpush.bf16.msra.mxu3 %v349_v3  ;;  %v253_v16 = vld [vmem:[%s476_s0] sm:$0xf]  ;;  %v332_v17 = vld [vmem:[%s476_s0 + $0x4] sm:$0xf0]  ;;  %v331_v20 = vld [vmem:[%s476_s0 + $0x4] sm:$0xf]  ;;  %v262_v25 = vor.u32 %v334_v19, %v261_v18 }
   0x8   :  { %v255_v21 = vld [vmem:[%s476_s0 + $0x8] sm:$0xf0]  ;;  %v333_v22 = vld [vmem:[%s476_s0 + $0x14] sm:$0xf]  ;;  %v263_v23 = vld [vmem:[%s476_s0 + $0x18] sm:$0xf0]  ;;  %v254_v24 = vor.u32 %v332_v17, %v253_v16 }
   0x9   :  { %v258_v26 = vor.u32 %v331_v20, %v255_v21  ;;  %v266_v27 = vor.u32 %v333_v22, %v263_v23  ;;  %v367_v29 = vld [vmem:[%s477_s2] ss:$0 sm:$0xff] }
   0xa   :  { %180 = vmatpush.bf16.msra.mxu0 %v340_v4  ;;  %353 = vmatpush.bf16.msra.mxu2 %v340_v4 }
   0xb   :  { %199 = vmatpush.bf16.msra.mxu1 %v348_v5  ;;  %361 = vmatpush.bf16.msra.mxu3 %v348_v5 }
   0xe   :  { %181 = vmatpush.bf16.msra.mxu0 %v339_v6  ;;  %354 = vmatpush.bf16.msra.mxu2 %v339_v6 }
   0xf   :  { %200 = vmatpush.bf16.msra.mxu1 %v347_v7  ;;  %362 = vmatpush.bf16.msra.mxu3 %v347_v7 }
  0x12   :  { %182 = vmatpush.bf16.msra.mxu0 %v338_v8  ;;  %355 = vmatpush.bf16.msra.mxu2 %v338_v8 }
  0x13   :  { %201 = vmatpush.bf16.msra.mxu1 %v346_v9  ;;  %363 = vmatpush.bf16.msra.mxu3 %v346_v9 }
  0x16   :  { %183 = vmatpush.bf16.msra.mxu0 %v337_v10  ;;  %356 = vmatpush.bf16.msra.mxu2 %v337_v10 }
  0x17   :  { %202 = vmatpush.bf16.msra.mxu1 %v345_v11  ;;  %364 = vmatpush.bf16.msra.mxu3 %v345_v11 }
  0x1a   :  { %184 = vmatpush.bf16.msra.mxu0 %v336_v12  ;;  %357 = vmatpush.bf16.msra.mxu2 %v336_v12 }
  0x1b   :  { %203 = vmatpush.bf16.msra.mxu1 %v344_v13  ;;  %365 = vmatpush.bf16.msra.mxu3 %v344_v13 }
  0x1e   :  { %185 = vmatpush.bf16.msra.mxu0 %v335_v14  ;;  %358 = vmatpush.bf16.msra.mxu2 %v335_v14 }
  0x1f   :  { %204 = vmatpush.bf16.msra.mxu1 %v343_v15  ;;  %366 = vmatpush.bf16.msra.mxu3 %v343_v15 }
  0x21   :  { %186 = vmatmul.bf16.vlgmr.msra.gmra.mxu0 %v254_v24  ;;  %191 = vmatmul.bf16.vlgmr.msra.gmra.mxu2 %v262_v25 }
  0x22   :  { %205 = vmatmul.bf16.vlgmr.msra.gmra.mxu1 %v258_v26  ;;  %210 = vmatmul.bf16.vlgmr.msra.gmra.mxu3 %v266_v27 }
  0x9e   :  { %v187_v28 = vpop.f32.mrf.mxu0 }
  0x9f   :  { %v206_v30 = vpop.f32.mrf.mxu1 }
  0xa0   :  { %v207_v31 = vadd.f32 %v206_v30, %v187_v28 }
  0xa2   :  { %v235_v32 = vadd.f32 %v367_v29, %v207_v31 }
  0xa4   :  { %v239_v33 = vmax.f32 %v235_v32, 0.0  ;;  %v192_v34 = vpop.f32.mrf.mxu2 }
  0xa5   :  { %v211_v35 = vpop.f32.mrf.mxu3 }
  0xa6   :  { %243 = vst [vmem:[%s478_s3] sm:$0xff] %v239_v33  ;;  %v212_v36 = vadd.f32 %v211_v35, %v192_v34  ;;  %v189_v37 = vpop.f32.mrf.mxu0 }
  0xa7   :  { %v208_v38 = vpop.f32.mrf.mxu1 }
  0xa8   :  { %v237_v39 = vadd.f32 %v367_v29, %v212_v36  ;;  %v209_v40 = vadd.f32 %v208_v38, %v189_v37 }
  0xaa   :  { %v241_v41 = vmax.f32 %v237_v39, 0.0  ;;  %v236_v42 = vadd.f32 %v367_v29, %v209_v40 }
  0xac   :  { %245 = vst [vmem:[%s478_s3 + $0x10] sm:$0xff] %v241_v41  ;;  %v240_v43 = vmax.f32 %v236_v42, 0.0  ;;  %v194_v44 = vpop.f32.mrf.mxu2 }
  0xad   :  { %v213_v45 = vpop.f32.mrf.mxu3 }
  0xae   :  { %244 = vst [vmem:[%s478_s3 + $0x8] sm:$0xff] %v240_v43  ;;  %v214_v46 = vadd.f32 %v213_v45, %v194_v44 }
  0xb0   :  { %v238_v47 = vadd.f32 %v367_v29, %v214_v46 }
  0xb2   :  { %v242_v48 = vmax.f32 %v238_v47, 0.0 }
  0xb4   :  { %246 = vst [vmem:[%s478_s3 + $0x18] sm:$0xff] %v242_v48 }

// kernel: encoder_forward.7
= control target key start
LH: loop header
LB: loop body
LE: loop exit
PB: predicated region body
PF: predicated region fallthrough
CT: control target
= control target key end

     0   :  { %s648_s1 = inlined_call_operand.vmem [shape: bf16[384,128], index: 1, kind: input, shape index: {}]   ;;  %s649_s0 = inlined_call_operand.vmem [shape: bf16[32,384], index: 0, kind: input, shape index: {}]   ;;  %s650_s2 = inlined_call_operand.vmem [shape: f32[1,128], index: 2, kind: input, shape index: {}]   ;;  %s651_s3 = inlined_call_operand.vmem [shape: f32[32,128], index: 3, kind: output, shape index: {}]  }
   0x1   :  { %v479_v0 = vld [vmem:[%s648_s1 + $0x38] sm:$0xff]  ;;  %v478_v3 = vld [vmem:[%s648_s1 + $0x30] sm:$0xff]  ;;  %v477_v6 = vld [vmem:[%s648_s1 + $0x28] sm:$0xff] }
   0x2   :  { %v487_v1 = vld [vmem:[%s648_s1 + $0x78] sm:$0xff]  ;;  %258 = vmatpush.bf16.msra.mxu0 %v479_v0  ;;  %v486_v4 = vld [vmem:[%s648_s1 + $0x70] sm:$0xff]  ;;  %496 = vmatpush.bf16.msra.mxu3 %v479_v0  ;;  %v485_v7 = vld [vmem:[%s648_s1 + $0x68] sm:$0xff] }
   0x3   :  { %v495_v2 = vld [vmem:[%s648_s1 + $0xb8] sm:$0xff]  ;;  %277 = vmatpush.bf16.msra.mxu1 %v487_v1  ;;  %v494_v5 = vld [vmem:[%s648_s1 + $0xb0] sm:$0xff]  ;;  %v493_v8 = vld [vmem:[%s648_s1 + $0xa8] sm:$0xff] }
   0x4   :  { %296 = vmatpush.bf16.msra.mxu2 %v495_v2  ;;  %v476_v9 = vld [vmem:[%s648_s1 + $0x20] sm:$0xff]  ;;  %v475_v12 = vld [vmem:[%s648_s1 + $0x18] sm:$0xff]  ;;  %v474_v15 = vld [vmem:[%s648_s1 + $0x10] sm:$0xff] }
   0x5   :  { %v484_v10 = vld [vmem:[%s648_s1 + $0x60] sm:$0xff]  ;;  %v483_v13 = vld [vmem:[%s648_s1 + $0x58] sm:$0xff]  ;;  %v482_v16 = vld [vmem:[%s648_s1 + $0x50] sm:$0xff] }
   0x6   :  { %259 = vmatpush.bf16.msra.mxu0 %v478_v3  ;;  %497 = vmatpush.bf16.msra.mxu3 %v478_v3  ;;  %v492_v11 = vld [vmem:[%s648_s1 + $0xa0] sm:$0xff]  ;;  %v491_v14 = vld [vmem:[%s648_s1 + $0x98] sm:$0xff]  ;;  %v490_v17 = vld [vmem:[%s648_s1 + $0x90] sm:$0xff] }
   0x7   :  { %278 = vmatpush.bf16.msra.mxu1 %v486_v4  ;;  %v473_v18 = vld [vmem:[%s648_s1 + $0x8] sm:$0xff]  ;;  %v472_v21 = vld [vmem:[%s648_s1] sm:$0xff]  ;;  %v350_v27 = vld [vmem:[%s649_s0 + $0xc] sm:$0xf0] }
   0x8   :  { %297 = vmatpush.bf16.msra.mxu2 %v494_v5  ;;  %v481_v19 = vld [vmem:[%s648_s1 + $0x48] sm:$0xff]  ;;  %v480_v22 = vld [vmem:[%s648_s1 + $0x40] sm:$0xff]  ;;  %v468_v29 = vld [vmem:[%s649_s0 + $0x10] sm:$0xf0] }
   0x9   :  { %v489_v20 = vld [vmem:[%s648_s1 + $0x88] sm:$0xff]  ;;  %v488_v23 = vld [vmem:[%s648_s1 + $0x80] sm:$0xff]  ;;  %v360_v30 = vld [vmem:[%s649_s0 + $0x18] sm:$0xf] }
   0xa   :  { %260 = vmatpush.bf16.msra.mxu0 %v477_v6  ;;  %498 = vmatpush.bf16.msra.mxu3 %v477_v6  ;;  %v348_v24 = vld [vmem:[%s649_s0] sm:$0xf]  ;;  %v467_v25 = vld [vmem:[%s649_s0 + $0x8] sm:$0xf0]  ;;  %v466_v26 = vld [vmem:[%s649_s0 + $0x4] sm:$0xf] }
   0xb   :  { %279 = vmatpush.bf16.msra.mxu1 %v485_v7  ;;  %v356_v28 = vld [vmem:[%s649_s0 + $0x8] sm:$0xf]  ;;  %v470_v31 = vld [vmem:[%s649_s0 + $0x20] sm:$0xf0]  ;;  %v349_v32 = vor.u32 %v467_v25, %v348_v24  ;;  %v353_v33 = vor.u32 %v466_v26, %v350_v27  ;;  %v469_v36 = vld [vmem:[%s649_s0 + $0x1c] sm:$0xf] }
   0xc   :  { %298 = vmatpush.bf16.msra.mxu2 %v493_v8  ;;  %v357_v34 = vor.u32 %v468_v29, %v356_v28  ;;  %v361_v35 = vor.u32 %v470_v31, %v360_v30  ;;  %v362_v37 = vld [vmem:[%s649_s0 + $0x24] sm:$0xf0]  ;;  %v368_v38 = vld [vmem:[%s649_s0 + $0x20] sm:$0xf]  ;;  %v471_v39 = vld [vmem:[%s649_s0 + $0x28] sm:$0xf0] }
   0xd   :  { %v365_v40 = vor.u32 %v469_v36, %v362_v37  ;;  %v369_v41 = vor.u32 %v471_v39, %v368_v38  ;;  %v504_v45 = vld [vmem:[%s650_s2] ss:$0 sm:$0xff] }
   0xe   :  { %261 = vmatpush.bf16.msra.mxu0 %v476_v9  ;;  %499 = vmatpush.bf16.msra.mxu3 %v476_v9 }
   0xf   :  { %280 = vmatpush.bf16.msra.mxu1 %v484_v10 }
  0x10   :  { %299 = vmatpush.bf16.msra.mxu2 %v492_v11 }
  0x12   :  { %262 = vmatpush.bf16.msra.mxu0 %v475_v12  ;;  %500 = vmatpush.bf16.msra.mxu3 %v475_v12 }
  0x13   :  { %281 = vmatpush.bf16.msra.mxu1 %v483_v13 }
  0x14   :  { %300 = vmatpush.bf16.msra.mxu2 %v491_v14 }
  0x16   :  { %263 = vmatpush.bf16.msra.mxu0 %v474_v15  ;;  %501 = vmatpush.bf16.msra.mxu3 %v474_v15 }
  0x17   :  { %282 = vmatpush.bf16.msra.mxu1 %v482_v16 }
  0x18   :  { %301 = vmatpush.bf16.msra.mxu2 %v490_v17 }
  0x1a   :  { %264 = vmatpush.bf16.msra.mxu0 %v473_v18  ;;  %502 = vmatpush.bf16.msra.mxu3 %v473_v18 }
  0x1b   :  { %283 = vmatpush.bf16.msra.mxu1 %v481_v19 }
  0x1c   :  { %302 = vmatpush.bf16.msra.mxu2 %v489_v20 }
  0x1e   :  { %265 = vmatpush.bf16.msra.mxu0 %v472_v21  ;;  %503 = vmatpush.bf16.msra.mxu3 %v472_v21 }
  0x1f   :  { %284 = vmatpush.bf16.msra.mxu1 %v480_v22 }
  0x20   :  { %303 = vmatpush.bf16.msra.mxu2 %v488_v23 }
  0x21   :  { %266 = vmatmul.bf16.vlgmr.msra.gmra.mxu0 %v349_v32  ;;  %271 = vmatmul.bf16.vlgmr.msra.gmra.mxu3 %v361_v35 }
  0x22   :  { %285 = vmatmul.bf16.vlgmr.msra.gmra.mxu1 %v353_v33 }
  0x23   :  { %304 = vmatmul.bf16.vlgmr.msra.gmra.mxu2 %v357_v34 }
  0x32   :  { %290 = vmatmul.bf16.gmra.mxu1 %v365_v40 }
  0x33   :  { %309 = vmatmul.bf16.gmra.mxu2 %v369_v41 }
  0x9e   :  { %v267_v43 = vpop.f32.mrf.mxu0 }
  0x9f   :  { %v286_v42 = vpop.f32.mrf.mxu1 }
  0xa0   :  { %v287_v44 = vadd.f32 %v286_v42, %v267_v43 }
  0xa4   :  { %v272_v56 = vpop.f32.mrf.mxu3 }
  0xa6   :  { %v305_v46 = vpop.f32.mrf.mxu2  ;;  %v269_v50 = vpop.f32.mrf.mxu0 }
  0xa7   :  { %v306_v47 = vadd.f32 %v305_v46, %v287_v44  ;;  %v288_v48 = vpop.f32.mrf.mxu1 }
  0xa8   :  { %v289_v51 = vadd.f32 %v288_v48, %v269_v50 }
  0xa9   :  { %v334_v49 = vadd.f32 %v504_v45, %v306_v47 }
  0xab   :  { %338 = vst [vmem:[%s651_s3] sm:$0xff] %v334_v49 }
  0xac   :  { %v274_v62 = vpop.f32.mrf.mxu3 }
  0xae   :  { %v307_v52 = vpop.f32.mrf.mxu2 }
  0xaf   :  { %v308_v53 = vadd.f32 %v307_v52, %v289_v51  ;;  %v291_v54 = vpop.f32.mrf.mxu1 }
  0xb0   :  { %v292_v57 = vadd.f32 %v291_v54, %v272_v56 }
  0xb1   :  { %v335_v55 = vadd.f32 %v504_v45, %v308_v53 }
  0xb3   :  { %339 = vst [vmem:[%s651_s3 + $0x8] sm:$0xff] %v335_v55 }
  0xb6   :  { %v310_v58 = vpop.f32.mrf.mxu2 }
  0xb7   :  { %v311_v59 = vadd.f32 %v310_v58, %v292_v57  ;;  %v293_v61 = vpop.f32.mrf.mxu1 }
  0xb8   :  { %v294_v63 = vadd.f32 %v293_v61, %v274_v62 }
  0xb9   :  { %v336_v60 = vadd.f32 %v504_v45, %v311_v59 }
  0xbb   :  { %340 = vst [vmem:[%s651_s3 + $0x10] sm:$0xff] %v336_v60 }
  0xbe   :  { %v312_v0 = vpop.f32.mrf.mxu2 }
  0xbf   :  { %v313_v1 = vadd.f32 %v312_v0, %v294_v63 }
  0xc1   :  { %v337_v2 = vadd.f32 %v504_v45, %v313_v1 }
  0xc3   :  { %341 = vst [vmem:[%s651_s3 + $0x18] sm:$0xff] %v337_v2 }

// kernel: encoder_forward.8
= control target key start
LH: loop header
LB: loop body
LE: loop exit
PB: predicated region body
PF: predicated region fallthrough
CT: control target
= control target key end

     0   :  { %s738_s1 = inlined_call_operand.vmem [shape: bf16[384,128], index: 1, kind: input, shape index: {}]   ;;  %s739_s0 = inlined_call_operand.vmem [shape: bf16[32,384], index: 0, kind: input, shape index: {}]   ;;  %s740_s2 = inlined_call_operand.vmem [shape: bf16[128,128], index: 2, kind: input, shape index: {}]   ;;  %s741_s3 = inlined_call_operand.vmem [shape: f32[32,128], index: 3, kind: input, shape index: {}]   ;;  %s742_s4 = inlined_call_operand.vmem [shape: f32[32,128], index: 4, kind: output, shape index: {}]  }
   0x1   :  { %v544_v0 = vld [vmem:[%s738_s1 + $0x38] sm:$0xff]  ;;  %v543_v3 = vld [vmem:[%s738_s1 + $0x30] sm:$0xff]  ;;  %v542_v6 = vld [vmem:[%s738_s1 + $0x28] sm:$0xff] }
   0x2   :  { %v552_v1 = vld [vmem:[%s738_s1 + $0x78] sm:$0xff]  ;;  %247 = vmatpush.bf16.msra.mxu0 %v544_v0  ;;  %v551_v4 = vld [vmem:[%s738_s1 + $0x70] sm:$0xff]  ;;  %v550_v7 = vld [vmem:[%s738_s1 + $0x68] sm:$0xff] }
   0x3   :  { %v560_v2 = vld [vmem:[%s738_s1 + $0xb8] sm:$0xff]  ;;  %266 = vmatpush.bf16.msra.mxu1 %v552_v1  ;;  %v559_v5 = vld [vmem:[%s738_s1 + $0xb0] sm:$0xff]  ;;  %v558_v8 = vld [vmem:[%s738_s1 + $0xa8] sm:$0xff] }
   0x4   :  { %285 = vmatpush.bf16.msra.mxu2 %v560_v2  ;;  %v541_v9 = vld [vmem:[%s738_s1 + $0x20] sm:$0xff]  ;;  %v540_v12 = vld [vmem:[%s738_s1 + $0x18] sm:$0xff]  ;;  %v539_v15 = vld [vmem:[%s738_s1 + $0x10] sm:$0xff] }
   0x5   :  { %v549_v10 = vld [vmem:[%s738_s1 + $0x60] sm:$0xff]  ;;  %v548_v13 = vld [vmem:[%s738_s1 + $0x58] sm:$0xff]  ;;  %v547_v16 = vld [vmem:[%s738_s1 + $0x50] sm:$0xff] }
   0x6   :  { %248 = vmatpush.bf16.msra.mxu0 %v543_v3  ;;  %v557_v11 = vld [vmem:[%s738_s1 + $0xa0] sm:$0xff]  ;;  %v556_v14 = vld [vmem:[%s738_s1 + $0x98] sm:$0xff]  ;;  %v19_v18 = vld [vmem:[%s739_s0 + $0xc] sm:$0xff] }
   0x7   :  { %267 = vmatpush.bf16.msra.mxu1 %v551_v4  ;;  %v17_v17 = vld [vmem:[%s739_s0] sm:$0xff]  ;;  %v568_v19 = vld [vmem:[%s740_s2 + $0x38] sm:$0xff]  ;;  %v555_v20 = vld [vmem:[%s738_s1 + $0x90] sm:$0xff]  ;;  %v28_v25 = vunpack.c.l.bf16 %v19_v18  ;;  %v29_v27 = vunpack.c.h.bf16 %v19_v18 }
   0x8   :  { %286 = vmatpush.bf16.msra.mxu2 %v559_v5  ;;  %v18_v21 = vld [vmem:[%s739_s0 + $0x8] sm:$0xf]  ;;  %v20_v22 = vld [vmem:[%s739_s0 + $0x14] sm:$0xf]  ;;  %378 = vmatpush.bf16.msra.mxu3 %v568_v19  ;;  %v25_v24 = vunpack.c.l.bf16 %v17_v17  ;;  %v26_v26 = vunpack.c.h.bf16 %v17_v17  ;;  %v537_v38 = vld [vmem:[%s738_s1] sm:$0xff] }
   0x9   :  { %v567_v23 = vld [vmem:[%s740_s2 + $0x30] sm:$0xff]  ;;  %v538_v28 = vld [vmem:[%s738_s1 + $0x8] sm:$0xff]  ;;  %v27_v30 = vunpack.c.l.bf16 %v18_v21  ;;  %v30_v31 = vunpack.c.l.bf16 %v20_v22  ;;  %v40_v35 = vmax.f32 %v28_v25, 0.0  ;;  %v41_v37 = vmax.f32 %v29_v27, 0.0  ;;  %v545_v39 = vld [vmem:[%s738_s1 + $0x40] sm:$0xff] }
   0xa   :  { %249 = vmatpush.bf16.msra.mxu0 %v542_v6  ;;  %v546_v29 = vld [vmem:[%s738_s1 + $0x48] sm:$0xff]  ;;  %v37_v34 = vmax.f32 %v25_v24, 0.0  ;;  %v38_v36 = vmax.f32 %v26_v26, 0.0  ;;  %v553_v42 = vld [vmem:[%s738_s1 + $0x80] sm:$0xff]  ;;  %v21_v46 = vld [vmem:[%s739_s0 + $0x18] sm:$0xff] }
   0xb   :  { %268 = vmatpush.bf16.msra.mxu1 %v550_v7  ;;  %v554_v32 = vld [vmem:[%s738_s1 + $0x88] sm:$0xff]  ;;  %v39_v40 = vmax.f32 %v27_v30, 0.0  ;;  %v42_v41 = vmax.f32 %v30_v31, 0.0  ;;  %v22_v48 = vld [vmem:[%s739_s0 + $0x20] sm:$0xf]  ;;  %v31_v50 = vunpack.c.l.bf16 %v21_v46  ;;  %v32_v52 = vunpack.c.h.bf16 %v21_v46  ;;  %v564_v2 = vld [vmem:[%s740_s2 + $0x18] sm:$0xff] }
   0xc   :  { %287 = vmatpush.bf16.msra.mxu2 %v558_v8  ;;  %379 = vmatpush.bf16.msra.mxu3 %v567_v23  ;;  %v566_v33 = vld [vmem:[%s740_s2 + $0x28] sm:$0xff]  ;;  %v49_v43 = vpack.c.bf16 %v40_v35, %v37_v34  ;;  %v50_v44 = vpack.c.bf16 %v41_v37, %v38_v36  ;;  %v33_v54 = vunpack.c.l.bf16 %v22_v48  ;;  %v565_v1 = vld [vmem:[%s740_s2 + $0x20] sm:$0xff]  ;;  %v563_v3 = vld [vmem:[%s740_s2 + $0x10] sm:$0xff] }
   0xd   :  { %v51_v45 = vpack.c.bf16 %v42_v41, %v39_v40  ;;  %v23_v47 = vld [vmem:[%s739_s0 + $0x24] sm:$0xff]  ;;  %v24_v49 = vld [vmem:[%s739_s0 + $0x2c] sm:$0xf]  ;;  %v43_v56 = vmax.f32 %v31_v50, 0.0  ;;  %v44_v58 = vmax.f32 %v32_v52, 0.0  ;;  %v313_v41 = vld [vmem:[%s741_s3 + $0x18] sm:$0xff] }
   0xe   :  { %250 = vmatpush.bf16.msra.mxu0 %v541_v9  ;;  %v34_v51 = vunpack.c.l.bf16 %v23_v47  ;;  %v35_v53 = vunpack.c.h.bf16 %v23_v47  ;;  %v36_v55 = vunpack.c.l.bf16 %v24_v49  ;;  %v45_v60 = vmax.f32 %v33_v54, 0.0  ;;  %v562_v4 = vld [vmem:[%s740_s2 + $0x8] sm:$0xff]  ;;  %v561_v5 = vld [vmem:[%s740_s2] sm:$0xff] }
   0xf   :  { %269 = vmatpush.bf16.msra.mxu1 %v549_v10  ;;  %v311_v35 = vld [vmem:[%s741_s3 + $0x8] sm:$0xff] }
  0x10   :  { %288 = vmatpush.bf16.msra.mxu2 %v557_v11  ;;  %380 = vmatpush.bf16.msra.mxu3 %v566_v33  ;;  %v46_v57 = vmax.f32 %v34_v51, 0.0  ;;  %v47_v59 = vmax.f32 %v35_v53, 0.0  ;;  %v48_v61 = vmax.f32 %v36_v55, 0.0 }
  0x12   :  { %251 = vmatpush.bf16.msra.mxu0 %v540_v12  ;;  %v52_v62 = vpack.c.bf16 %v46_v57, %v43_v56  ;;  %v53_v63 = vpack.c.bf16 %v47_v59, %v44_v58  ;;  %v54_v0 = vpack.c.bf16 %v48_v61, %v45_v60 }
  0x13   :  { %270 = vmatpush.bf16.msra.mxu1 %v548_v13 }
  0x14   :  { %289 = vmatpush.bf16.msra.mxu2 %v556_v14  ;;  %381 = vmatpush.bf16.msra.mxu3 %v565_v1 }
  0x16   :  { %252 = vmatpush.bf16.msra.mxu0 %v539_v15 }
  0x17   :  { %271 = vmatpush.bf16.msra.mxu1 %v547_v16 }
  0x18   :  { %290 = vmatpush.bf16.msra.mxu2 %v555_v20  ;;  %382 = vmatpush.bf16.msra.mxu3 %v564_v2 }
  0x1a   :  { %253 = vmatpush.bf16.msra.mxu0 %v538_v28 }
  0x1b   :  { %272 = vmatpush.bf16.msra.mxu1 %v546_v29 }
  0x1c   :  { %291 = vmatpush.bf16.msra.mxu2 %v554_v32  ;;  %383 = vmatpush.bf16.msra.mxu3 %v563_v3  ;;  %v310_v32 = vld [vmem:[%s741_s3] sm:$0xff] }
  0x1e   :  { %254 = vmatpush.bf16.msra.mxu0 %v537_v38  ;;  %v312_v38 = vld [vmem:[%s741_s3 + $0x10] sm:$0xff] }
  0x1f   :  { %273 = vmatpush.bf16.msra.mxu1 %v545_v39 }
  0x20   :  { %292 = vmatpush.bf16.msra.mxu2 %v553_v42  ;;  %384 = vmatpush.bf16.msra.mxu3 %v562_v4 }
  0x21   :  { %255 = vmatmul.bf16.vlgmr.msra.gmra.mxu0 %v49_v43 }
  0x22   :  { %274 = vmatmul.bf16.vlgmr.msra.gmra.mxu1 %v50_v44 }
  0x23   :  { %293 = vmatmul.bf16.vlgmr.msra.gmra.mxu2 %v51_v45 }
  0x24   :  { %385 = vmatpush.bf16.msra.mxu3 %v561_v5 }
  0x31   :  { %260 = vmatmul.bf16.gmra.mxu0 %v52_v62 }
  0x32   :  { %279 = vmatmul.bf16.gmra.mxu1 %v53_v63 }
  0x33   :  { %298 = vmatmul.bf16.gmra.mxu2 %v54_v0 }
  0x9e   :  { %v256_v6 = vpop.f32.mrf.mxu0 }
  0x9f   :  { %v275_v7 = vpop.f32.mrf.mxu1 }
  0xa0   :  { %v276_v11 = vadd.f32 %v275_v7, %v256_v6 }
  0xa6   :  { %v294_v8 = vpop.f32.mrf.mxu2  ;;  %v258_v9 = vpop.f32.mrf.mxu0 }
  0xa7   :  { %v277_v10 = vpop.f32.mrf.mxu1  ;;  %v295_v12 = vadd.f32 %v294_v8, %v276_v11 }
  0xa8   :  { %v278_v13 = vadd.f32 %v277_v10, %v258_v9 }
  0xa9   :  { %v304_v18 = vmax.f32 %v295_v12, 0.0 }
  0xae   :  { %v296_v14 = vpop.f32.mrf.mxu2  ;;  %v261_v16 = vpop.f32.mrf.mxu0 }
  0xaf   :  { %v297_v15 = vadd.f32 %v296_v14, %v278_v13  ;;  %v280_v17 = vpop.f32.mrf.mxu1 }
  0xb0   :  { %v281_v22 = vadd.f32 %v280_v17, %v261_v16 }
  0xb1   :  { %v305_v19 = vmax.f32 %v297_v15, 0.0 }
  0xb3   :  { %v308_v20 = vpack.c.bf16 %v305_v19, %v304_v18 }
  0xb5   :  { %386 = vmatmul.bf16.vlgmr.msra.gmra.mxu3 %v308_v20 }
  0xb6   :  { %v299_v21 = vpop.f32.mrf.mxu2  ;;  %v263_v23 = vpop.f32.mrf.mxu0 }
  0xb7   :  { %v282_v24 = vpop.f32.mrf.mxu1  ;;  %v300_v25 = vadd.f32 %v299_v21, %v281_v22 }
  0xb8   :  { %v283_v26 = vadd.f32 %v282_v24, %v263_v23 }
  0xb9   :  { %v306_v29 = vmax.f32 %v300_v25, 0.0 }
  0xbe   :  { %v301_v27 = vpop.f32.mrf.mxu2 }
  0xbf   :  { %v302_v28 = vadd.f32 %v301_v27, %v283_v26 }
  0xc1   :  { %v307_v30 = vmax.f32 %v302_v28, 0.0 }
  0xc3   :  { %v309_v31 = vpack.c.bf16 %v307_v30, %v306_v29 }
  0xc5   :  { %391 = vmatmul.bf16.gmra.mxu3 %v309_v31 }
 0x138   :  { %v387_v33 = vpop.f32.mrf.mxu3 }
 0x139   :  { %v397_v34 = vadd.f32 %v387_v33, %v310_v32 }
 0x13b   :  { %401 = vst [vmem:[%s742_s4] sm:$0xff] %v397_v34 }
 0x140   :  { %v389_v36 = vpop.f32.mrf.mxu3 }
 0x141   :  { %v398_v37 = vadd.f32 %v389_v36, %v311_v35 }
 0x143   :  { %402 = vst [vmem:[%s742_s4 + $0x8] sm:$0xff] %v398_v37 }
 0x148   :  { %v392_v39 = vpop.f32.mrf.mxu3 }
 0x149   :  { %v399_v40 = vadd.f32 %v392_v39, %v312_v38 }
 0x14b   :  { %403 = vst [vmem:[%s742_s4 + $0x10] sm:$0xff] %v399_v40 }
 0x150   :  { %v394_v42 = vpop.f32.mrf.mxu3 }
 0x151   :  { %v400_v43 = vadd.f32 %v394_v42, %v313_v41 }
 0x153   :  { %404 = vst [vmem:[%s742_s4 + $0x18] sm:$0xff] %v400_v43 }

// kernel: encoder_forward.9
= control target key start
LH: loop header
LB: loop body
LE: loop exit
PB: predicated region body
PF: predicated region fallthrough
CT: control target
= control target key end

     0   :  { %s780_s0 = inlined_call_operand.vmem [shape: bf16[32,384], index: 0, kind: input, shape index: {}]   ;;  %s781_s1 = inlined_call_operand.vmem [shape: bf16[384,128], index: 1, kind: input, shape index: {}]   ;;  %s782_s2 = inlined_call_operand.vmem [shape: bf16[128,128], index: 2, kind: input, shape index: {}]   ;;  %s783_s3 = inlined_call_operand.vmem [shape: f32[32,128], index: 3, kind: input, shape index: {}]   ;;  %s784_s4 = inlined_call_operand.hbm [shape: f32[32,128], index: 4, kind: output, shape index: {}]  }
   0x1   :  { %v563_v0 = vld [vmem:[%s781_s1 + $0x38] sm:$0xff]  ;;  %v562_v3 = vld [vmem:[%s781_s1 + $0x30] sm:$0xff]  ;;  %v561_v6 = vld [vmem:[%s781_s1 + $0x28] sm:$0xff] }
   0x2   :  { %v571_v1 = vld [vmem:[%s781_s1 + $0x78] sm:$0xff]  ;;  %248 = vmatpush.bf16.msra.mxu0 %v563_v0  ;;  %v570_v4 = vld [vmem:[%s781_s1 + $0x70] sm:$0xff]  ;;  %v569_v7 = vld [vmem:[%s781_s1 + $0x68] sm:$0xff] }
   0x3   :  { %v579_v2 = vld [vmem:[%s781_s1 + $0xb8] sm:$0xff]  ;;  %267 = vmatpush.bf16.msra.mxu1 %v571_v1  ;;  %v578_v5 = vld [vmem:[%s781_s1 + $0xb0] sm:$0xff]  ;;  %v577_v8 = vld [vmem:[%s781_s1 + $0xa8] sm:$0xff] }
   0x4   :  { %286 = vmatpush.bf16.msra.mxu2 %v579_v2  ;;  %v560_v9 = vld [vmem:[%s781_s1 + $0x20] sm:$0xff] }
   0x5   :  { %v568_v10 = vld [vmem:[%s781_s1 + $0x60] sm:$0xff] }
   0x6   :  { %249 = vmatpush.bf16.msra.mxu0 %v562_v3 }
   0x7   :  { %268 = vmatpush.bf16.msra.mxu1 %v570_v4 }
   0x8   :  { %287 = vmatpush.bf16.msra.mxu2 %v578_v5 }
   0xa   :  { %250 = vmatpush.bf16.msra.mxu0 %v561_v6 }
   0xb   :  { %269 = vmatpush.bf16.msra.mxu1 %v569_v7 }
   0xc   :  { %9 = vsyncpa [#allocation3], 0  ;;  %288 = vmatpush.bf16.msra.mxu2 %v577_v8  ;;  %v576_v11 = vld [vmem:[%s781_s1 + $0xa0] sm:$0xff]  ;;  %v559_v12 = vld [vmem:[%s781_s1 + $0x18] sm:$0xff]  ;;  %s617_s22 = smov [#allocation2]   ;;  %s416_s26 = sshll.u32 %s784_s4, 4  ;;  %s417_s26 = int_to_ptr.hbm [resolvable:$true] %s416_s26 }
   0xd   :  { %v567_v13 = vld [vmem:[%s781_s1 + $0x58] sm:$0xff]  ;;  %v558_v15 = vld [vmem:[%s781_s1 + $0x10] sm:$0xff]  ;;  %v18_v17 = vld [vmem:[%s780_s0] sm:$0xff]  ;;  %s414_s23 = sshll.u32 %s617_s22, 4  ;;  %s618_s27 = smov 128   ;;  %s415_s23 = int_to_ptr.vmem [resolvable:$true] %s414_s23 }
   0xe   :  { %251 = vmatpush.bf16.msra.mxu0 %v560_v9  ;;  %v575_v14 = vld [vmem:[%s781_s1 + $0x98] sm:$0xff]  ;;  %v566_v16 = vld [vmem:[%s781_s1 + $0x50] sm:$0xff]  ;;  %v19_v21 = vld [vmem:[%s780_s0 + $0x8] sm:$0xf]  ;;  %v26_v24 = vunpack.c.l.bf16 %v18_v17  ;;  %v27_v26 = vunpack.c.h.bf16 %v18_v17  ;;  %s619_s28 = smov 8  }
   0xf   :  { %270 = vmatpush.bf16.msra.mxu1 %v568_v10  ;;  %v20_v18 = vld [vmem:[%s780_s0 + $0xc] sm:$0xff]  ;;  %v587_v19 = vld [vmem:[%s782_s2 + $0x38] sm:$0xff]  ;;  %v21_v22 = vld [vmem:[%s780_s0 + $0x14] sm:$0xf]  ;;  %v28_v30 = vunpack.c.l.bf16 %v19_v21 }
  0x10   :  { %289 = vmatpush.bf16.msra.mxu2 %v576_v11  ;;  %v574_v20 = vld [vmem:[%s781_s1 + $0x90] sm:$0xff]  ;;  %379 = vmatpush.bf16.msra.mxu3 %v587_v19  ;;  %v29_v25 = vunpack.c.l.bf16 %v20_v18  ;;  %v30_v27 = vunpack.c.h.bf16 %v20_v18  ;;  %v557_v28 = vld [vmem:[%s781_s1 + $0x8] sm:$0xff]  ;;  %v31_v31 = vunpack.c.l.bf16 %v21_v22  ;;  %v38_v34 = vmax.f32 %v26_v24, 0.0  ;;  %v556_v38 = vld [vmem:[%s781_s1] sm:$0xff] }
  0x11   :  { %v586_v23 = vld [vmem:[%s782_s2 + $0x30] sm:$0xff]  ;;  %v565_v29 = vld [vmem:[%s781_s1 + $0x48] sm:$0xff]  ;;  %v39_v36 = vmax.f32 %v27_v26, 0.0  ;;  %v564_v39 = vld [vmem:[%s781_s1 + $0x40] sm:$0xff]  ;;  %v40_v40 = vmax.f32 %v28_v30, 0.0 }
  0x12   :  { %252 = vmatpush.bf16.msra.mxu0 %v559_v12  ;;  %v573_v32 = vld [vmem:[%s781_s1 + $0x88] sm:$0xff]  ;;  %v41_v35 = vmax.f32 %v29_v25, 0.0  ;;  %v42_v37 = vmax.f32 %v30_v27, 0.0  ;;  %v43_v41 = vmax.f32 %v31_v31, 0.0  ;;  %v572_v42 = vld [vmem:[%s781_s1 + $0x80] sm:$0xff]  ;;  %v22_v46 = vld [vmem:[%s780_s0 + $0x18] sm:$0xff] }
  0x13   :  { %271 = vmatpush.bf16.msra.mxu1 %v567_v13  ;;  %v585_v33 = vld [vmem:[%s782_s2 + $0x28] sm:$0xff]  ;;  %v23_v48 = vld [vmem:[%s780_s0 + $0x20] sm:$0xf]  ;;  %v32_v50 = vunpack.c.l.bf16 %v22_v46  ;;  %v33_v52 = vunpack.c.h.bf16 %v22_v46  ;;  %v583_v2 = vld [vmem:[%s782_s2 + $0x18] sm:$0xff] }
  0x14   :  { %290 = vmatpush.bf16.msra.mxu2 %v575_v14  ;;  %380 = vmatpush.bf16.msra.mxu3 %v586_v23  ;;  %v50_v43 = vpack.c.bf16 %v41_v35, %v38_v34  ;;  %v51_v44 = vpack.c.bf16 %v42_v37, %v39_v36  ;;  %v52_v45 = vpack.c.bf16 %v43_v41, %v40_v40  ;;  %v24_v47 = vld [vmem:[%s780_s0 + $0x24] sm:$0xff]  ;;  %v25_v49 = vld [vmem:[%s780_s0 + $0x2c] sm:$0xf]  ;;  %v34_v54 = vunpack.c.l.bf16 %v23_v48  ;;  %v582_v3 = vld [vmem:[%s782_s2 + $0x10] sm:$0xff] }
  0x15   :  { %v35_v51 = vunpack.c.l.bf16 %v24_v47  ;;  %v36_v53 = vunpack.c.h.bf16 %v24_v47  ;;  %v37_v55 = vunpack.c.l.bf16 %v25_v49  ;;  %v44_v56 = vmax.f32 %v32_v50, 0.0  ;;  %v584_v1 = vld [vmem:[%s782_s2 + $0x20] sm:$0xff]  ;;  %v581_v4 = vld [vmem:[%s782_s2 + $0x8] sm:$0xff]  ;;  %v313_v40 = vld [vmem:[%s783_s3 + $0x10] sm:$0xff] }
  0x16   :  { %253 = vmatpush.bf16.msra.mxu0 %v558_v15  ;;  %v45_v58 = vmax.f32 %v33_v52, 0.0  ;;  %v46_v60 = vmax.f32 %v34_v54, 0.0  ;;  %v580_v5 = vld [vmem:[%s782_s2] sm:$0xff]  ;;  %v312_v36 = vld [vmem:[%s783_s3 + $0x8] sm:$0xff] }
  0x17   :  { %272 = vmatpush.bf16.msra.mxu1 %v566_v16  ;;  %v47_v57 = vmax.f32 %v35_v51, 0.0  ;;  %v48_v59 = vmax.f32 %v36_v53, 0.0  ;;  %v49_v61 = vmax.f32 %v37_v55, 0.0 }
  0x18   :  { %291 = vmatpush.bf16.msra.mxu2 %v574_v20  ;;  %381 = vmatpush.bf16.msra.mxu3 %v585_v33 }
  0x19   :  { %v53_v62 = vpack.c.bf16 %v47_v57, %v44_v56  ;;  %v54_v63 = vpack.c.bf16 %v48_v59, %v45_v58  ;;  %v55_v0 = vpack.c.bf16 %v49_v61, %v46_v60 }
  0x1a   :  { %254 = vmatpush.bf16.msra.mxu0 %v557_v28 }
  0x1b   :  { %273 = vmatpush.bf16.msra.mxu1 %v565_v29 }
  0x1c   :  { %292 = vmatpush.bf16.msra.mxu2 %v573_v32  ;;  %382 = vmatpush.bf16.msra.mxu3 %v584_v1  ;;  %v311_v32 = vld [vmem:[%s783_s3] sm:$0xff] }
  0x1e   :  { %255 = vmatpush.bf16.msra.mxu0 %v556_v38 }
  0x1f   :  { %274 = vmatpush.bf16.msra.mxu1 %v564_v39 }
  0x20   :  { %293 = vmatpush.bf16.msra.mxu2 %v572_v42  ;;  %383 = vmatpush.bf16.msra.mxu3 %v583_v2 }
  0x21   :  { %256 = vmatmul.bf16.vlgmr.msra.gmra.mxu0 %v50_v43 }
  0x22   :  { %275 = vmatmul.bf16.vlgmr.msra.gmra.mxu1 %v51_v44  ;;  %v314_v44 = vld [vmem:[%s783_s3 + $0x18] sm:$0xff] }
  0x23   :  { %294 = vmatmul.bf16.vlgmr.msra.gmra.mxu2 %v52_v45 }
  0x24   :  { %384 = vmatpush.bf16.msra.mxu3 %v582_v3 }
  0x28   :  { %385 = vmatpush.bf16.msra.mxu3 %v581_v4 }
  0x2c   :  { %386 = vmatpush.bf16.msra.mxu3 %v580_v5 }
  0x31   :  { %261 = vmatmul.bf16.gmra.mxu0 %v53_v62 }
  0x32   :  { %280 = vmatmul.bf16.gmra.mxu1 %v54_v63 }
  0x33   :  { %299 = vmatmul.bf16.gmra.mxu2 %v55_v0 }
  0x9e   :  { %v257_v6 = vpop.f32.mrf.mxu0 }
  0x9f   :  { %v276_v7 = vpop.f32.mrf.mxu1 }
  0xa0   :  { %v277_v11 = vadd.f32 %v276_v7, %v257_v6 }
  0xa6   :  { %v295_v8 = vpop.f32.mrf.mxu2  ;;  %v259_v9 = vpop.f32.mrf.mxu0 }
  0xa7   :  { %v278_v10 = vpop.f32.mrf.mxu1  ;;  %v296_v12 = vadd.f32 %v295_v8, %v277_v11 }
  0xa8   :  { %v279_v13 = vadd.f32 %v278_v10, %v259_v9 }
  0xa9   :  { %v305_v18 = vmax.f32 %v296_v12, 0.0 }
  0xae   :  { %v297_v14 = vpop.f32.mrf.mxu2  ;;  %v262_v16 = vpop.f32.mrf.mxu0 }
  0xaf   :  { %v298_v15 = vadd.f32 %v297_v14, %v279_v13  ;;  %v281_v17 = vpop.f32.mrf.mxu1 }
  0xb0   :  { %v282_v22 = vadd.f32 %v281_v17, %v262_v16 }
  0xb1   :  { %v306_v19 = vmax.f32 %v298_v15, 0.0 }
  0xb3   :  { %v309_v20 = vpack.c.bf16 %v306_v19, %v305_v18 }
  0xb5   :  { %387 = vmatmul.bf16.vlgmr.msra.gmra.mxu3 %v309_v20 }
  0xb6   :  { %v300_v21 = vpop.f32.mrf.mxu2  ;;  %v264_v23 = vpop.f32.mrf.mxu0 }
  0xb7   :  { %v283_v24 = vpop.f32.mrf.mxu1  ;;  %v301_v25 = vadd.f32 %v300_v21, %v282_v22 }
  0xb8   :  { %v284_v26 = vadd.f32 %v283_v24, %v264_v23 }
  0xb9   :  { %v307_v29 = vmax.f32 %v301_v25, 0.0 }
  0xbe   :  { %v302_v27 = vpop.f32.mrf.mxu2 }
  0xbf   :  { %v303_v28 = vadd.f32 %v302_v27, %v284_v26 }
  0xc1   :  { %v308_v30 = vmax.f32 %v303_v28, 0.0 }
  0xc3   :  { %v310_v31 = vpack.c.bf16 %v308_v30, %v307_v29 }
  0xc5   :  { %392 = vmatmul.bf16.gmra.mxu3 %v310_v31 }
 0x138   :  { %v388_v33 = vpop.f32.mrf.mxu3 }
 0x139   :  { %v398_v34 = vadd.f32 %v388_v33, %v311_v32 }
 0x13b   :  { %v402_v35 = vmax.f32 %v398_v34, 0.0 }
 0x13d   :  { %406 = vst [vmem:[#allocation2] sm:$0xff] %v402_v35 }
 0x140   :  { %v390_v37 = vpop.f32.mrf.mxu3 }
 0x141   :  { %v399_v38 = vadd.f32 %v390_v37, %v312_v36 }
 0x143   :  { %v403_v39 = vmax.f32 %v399_v38, 0.0 }
 0x145   :  { %407 = vst [vmem:[#allocation2 + $0x8] sm:$0xff] %v403_v39 }
 0x148   :  { %v393_v41 = vpop.f32.mrf.mxu3 }
 0x149   :  { %v400_v42 = vadd.f32 %v393_v41, %v313_v40 }
 0x14b   :  { %v404_v43 = vmax.f32 %v400_v42, 0.0 }
 0x14d   :  { %408 = vst [vmem:[#allocation2 + $0x10] sm:$0xff] %v404_v43 }
 0x150   :  { %v395_v45 = vpop.f32.mrf.mxu3 }
 0x151   :  { %v401_v46 = vadd.f32 %v395_v45, %v314_v44 }
 0x153   :  { %v405_v47 = vmax.f32 %v401_v46, 0.0 }
 0x155   :  { %409 = vst [vmem:[#allocation2 + $0x18] sm:$0xff] %v405_v47 }
 0x156   :  { %422 = dma.vmem_to_hbm [thread:$0]  %s415_s23, 512, %s417_s26, [#allocation3], %s618_s27, %s618_s27, %s619_s28  }
 0x157   :  { %615 = dma.done.wait [#allocation3], 512  }
 0x158   :  { %616 = vsyncadd [#allocation3], 4294966784 }
 0x159   :  { %427 = vsyncpa [#allocation3], 1 }

</bundles_post_ra>
